<compile_context>
chip_gen: v7x
topology: tpu7x:2x2x1
jax: 0.10.0
libtpu: 0.0.40
codegen_flags: <defaults>
</compile_context>

<pallas_src>
import functools

import jax
import jax.numpy as jnp
from jax.experimental import pallas as pl
from jax.experimental.pallas import tpu as pltpu


# ----------------------------------------------------------------------------
# Fused Pallas kernel
# ----------------------------------------------------------------------------
def _fused_cnn_kernel(t0_ref, w1s_ref, b1s_ref, w2s_ref, b2s_ref,
                      w3s_ref, b3s_ref, g_ref, fb1_ref, fw2_ref, fb2_ref,
                      o_ref, t1_ref, t2_ref, *, batch):
    """Whole SimpleCNN forward.

    Row-slab layout: for a conv layer with padded input rows p (p = y+1), the
    slab T[py] has rows (i, b) (i = pooled output row) and lanes
    (dy, xp, ci) with value padded_input[b, 2*i + py + dy, xp, ci].
    conv+bias+ReLU+pool then is:  max over (py, px) of
        ReLU(T[py] @ Wstack[px] + bias),  output rows (i, b), lanes (j, co).
    """
    f32 = jnp.float32
    B = batch

    def conv_pool(xrows, w_ref, bias_ref):
        # xrows: [slab_py0, slab_py1], each (Hh*B, 3*(W_in+2)*Cin)
        bias = bias_ref[...]                                   # (1, Wh*Cout)
        pooled = None
        for py in range(2):
            for px in range(2):
                cand = jnp.dot(xrows[py], w_ref[px],
                               preferred_element_type=f32) + bias
                cand = jnp.maximum(cand, 0.0)                  # conv+bias+ReLU
                pooled = cand if pooled is None else jnp.maximum(pooled, cand)
        return pooled                                          # (Hh*B, Wh*Cout)

    def scatter(pooled, dst_ref):
        # Write this layer's pooled output (rows (y, b), lanes (j, c)) into the
        # next layer's zero-initialized row-slab scratch: padded row p = y+1
        # goes to every slot (py, i, dy) with 2*i + py + dy == p, at lane
        # offset dy*(W+2)*C + C (the +C skips the x zero-padding column).
        h_in = pooled.shape[0] // B
        hh_next = dst_ref.shape[1] // B
        wpad_c = dst_ref.shape[-1] // 3                        # (W_in+2)*Cin
        width = pooled.shape[-1]                               # W_in*Cin
        cin = (wpad_c - width) // 2
        for y in range(h_in):
            p = y + 1
            src = pooled[y * B:(y + 1) * B, :]
            for py in range(2):
                for dy in range(3):
                    t = p - py - dy
                    if t >= 0 and t % 2 == 0 and (t // 2) < hh_next:
                        i = t // 2
                        off = dy * wpad_c + cin
                        dst_ref[py, i * B:(i + 1) * B, off:off + width] = src

    # Zero the row-slab scratches: this provides the conv zero padding
    # (boundary rows / columns that never get written).
    t1_ref[...] = jnp.zeros(t1_ref.shape, f32)
    t2_ref[...] = jnp.zeros(t2_ref.shape, f32)

    # layer 1: (16,16,1) -> (8,8,16)
    pooled1 = conv_pool([t0_ref[0], t0_ref[1]], w1s_ref, b1s_ref)   # (8B, 128)
    scatter(pooled1, t1_ref)

    # layer 2: (8,8,16) -> (4,4,32)
    pooled2 = conv_pool([t1_ref[0], t1_ref[1]], w2s_ref, b2s_ref)   # (4B, 128)
    scatter(pooled2, t2_ref)

    # layer 3: (4,4,32) -> (2,2,64)
    pooled3 = conv_pool([t2_ref[0], t2_ref[1]], w3s_ref, b3s_ref)   # (2B, 128)

    # fc1 + ReLU + fc2.  g_ref[i] is the fc1 weight block matching final
    # spatial row i (pre-permuted to the NHWC lane order), so no transpose.
    h = fb1_ref[...]                                                # (1, 128)
    for i in range(g_ref.shape[0]):
        h = h + jnp.dot(pooled3[i * B:(i + 1) * B, :], g_ref[i],
                        preferred_element_type=f32)
    h = jnp.maximum(h, 0.0)
    o_ref[...] = jnp.dot(h, fw2_ref[...], preferred_element_type=f32) + fb2_ref[...]


# ----------------------------------------------------------------------------
# One-time parameter repacking (host/XLA side, outside the forward path)
# ----------------------------------------------------------------------------
def _conv_wstack(w, w_in):
    """Repack HWIO conv weight (3,3,Cin,Cout) into per-pool-x-offset matrices.

    Returns (2, 3*(w_in+2)*Cin, (w_in//2)*Cout):
      Wstack[px][(dy, xp, ci), (j, co)] = w[dy, xp - 2j - px, ci, co]
      if 0 <= xp - 2j - px <= 2 else 0.
    The x taps, x subsampling and channel mixing are all folded into K.
    """
    cin, cout = w.shape[2], w.shape[3]
    wpad, wh = w_in + 2, w_in // 2
    xp = jnp.arange(wpad)[:, None]
    j = jnp.arange(wh)[None, :]
    out = []
    for px in (0, 1):
        dx = xp - 2 * j - px                                   # (wpad, wh)
        valid = (dx >= 0) & (dx <= 2)
        dxc = jnp.clip(dx, 0, 2)
        wg = w[:, dxc, :, :]                                   # (3, wpad, wh, cin, cout)
        wg = jnp.where(valid[None, :, :, None, None], wg, 0.0)
        wg = jnp.transpose(wg, (0, 1, 3, 2, 4))                # (3, wpad, cin, wh, cout)
        out.append(wg.reshape(3 * wpad * cin, wh * cout))
    return jnp.stack(out, axis=0)


def preprocess_params(params, input_size=(16, 16)):
    """Repack PyTorch-layout params into the fused-kernel layout (done once)."""
    H, W = input_size
    kp = {
        "w1s": _conv_wstack(params["w1"], W),                  # (2,  54, 128)
        "w2s": _conv_wstack(params["w2"], W // 2),             # (2, 480, 128)
        "w3s": _conv_wstack(params["w3"], W // 4),             # (2, 576, 128)
        "b1s": jnp.tile(params["b1"], W // 2)[None, :],        # (1, 128)
        "b2s": jnp.tile(params["b2"], W // 4)[None, :],
        "b3s": jnp.tile(params["b3"], W // 8)[None, :],
        "fb1": params["fb1"][None, :],
        "fw2": params["fw2"],
        "fb2": params["fb2"][None, :],
    }
    # fc1 consumes the NCHW (c, i, j) flatten in PyTorch; permute its rows once
    # so the kernel can use the natural (i, b) x (j, c) activation layout.
    c3 = params["w3"].shape[-1]
    hh3, wh3 = H // 8, W // 8
    nh = params["fw1"].shape[-1]
    kp["g"] = (params["fw1"].reshape(c3, hh3, wh3, nh)
               .transpose(1, 2, 0, 3).reshape(hh3, wh3 * c3, nh))   # (2, 128, 128)
    return kp


# ----------------------------------------------------------------------------
# Forward
# ----------------------------------------------------------------------------
@jax.jit
def simple_cnn_forward(kparams, x):
    """x: (B, H, W) float32 (the PyTorch forward does unsqueeze(1))."""
    B, H, W = x.shape
    num_classes = kparams["fw2"].shape[-1]
    c1 = kparams["b1s"].shape[1] // (W // 2)                   # 16
    c2 = kparams["b2s"].shape[1] // (W // 4)                   # 32

    # Layer-1 row slabs (the only per-forward glue): t0[py][i*B+b, dy*(W+2)+xp]
    # = x_padded[b, 2*i + py + dy, xp].
    xpad = jnp.pad(x, ((0, 0), (1, 1), (1, 1)))                # (B, H+2, W+2)
    slabs = []
    for py in range(2):
        blocks = [xpad[:, py + dy: py + dy + H - 1: 2, :] for dy in range(3)]
        s = jnp.concatenate(blocks, axis=-1)                   # (B, H//2, 3*(W+2))
        slabs.append(jnp.transpose(s, (1, 0, 2)).reshape((H // 2) * B, 3 * (W + 2)))
    t0 = jnp.stack(slabs, axis=0)                              # (2, (H//2)*B, 3*(W+2))

    kernel = functools.partial(_fused_cnn_kernel, batch=B)
    return pl.pallas_call(
        kernel,
        out_shape=jax.ShapeDtypeStruct((B, num_classes), jnp.float32),
        scratch_shapes=[
            pltpu.VMEM((2, (H // 4) * B, 3 * (W // 2 + 2) * c1), jnp.float32),
            pltpu.VMEM((2, (H // 8) * B, 3 * (W // 4 + 2) * c2), jnp.float32),
        ],
    )(t0, kparams["w1s"], kparams["b1s"], kparams["w2s"], kparams["b2s"],
      kparams["w3s"], kparams["b3s"], kparams["g"], kparams["fb1"],
      kparams["fw2"], kparams["fb2"])


# ----------------------------------------------------------------------------
# Params + pure-JAX reference (for the built-in correctness check)
# ----------------------------------------------------------------------------
def init_params(key, input_size=(16, 16), num_classes=2):
    fc_in = 64 * (input_size[0] // 8) * (input_size[1] // 8)
    ks = jax.random.split(key, 10)
    s = 0.05
    return {
        "w1": s * jax.random.normal(ks[0], (3, 3, 1, 16), jnp.float32),
        "b1": s * jax.random.normal(ks[1], (16,), jnp.float32),
        "w2": s * jax.random.normal(ks[2], (3, 3, 16, 32), jnp.float32),
        "b2": s * jax.random.normal(ks[3], (32,), jnp.float32),
        "w3": s * jax.random.normal(ks[4], (3, 3, 32, 64), jnp.float32),
        "b3": s * jax.random.normal(ks[5], (64,), jnp.float32),
        "fw1": s * jax.random.normal(ks[6], (fc_in, 128), jnp.float32),
        "fb1": s * jax.random.normal(ks[7], (128,), jnp.float32),
        "fw2": s * jax.random.normal(ks[8], (128, num_classes), jnp.float32),
        "fb2": s * jax.random.normal(ks[9], (num_classes,), jnp.float32),
    }


def _reference_forward(params, x):
    """Pure-JAX reference matching the PyTorch module semantics."""
    hp = jax.lax.Precision.HIGHEST
    h = x[:, None, :, :]                                       # NCHW
    for wk, bk in (("w1", "b1"), ("w2", "b2"), ("w3", "b3")):
        w = jnp.transpose(params[wk], (3, 2, 0, 1))            # HWIO -> OIHW
        h = jax.lax.conv_general_dilated(
            h, w, window_strides=(1, 1), padding=((1, 1), (1, 1)),
            dimension_numbers=("NCHW", "OIHW", "NCHW"), precision=hp)
        h = jnp.maximum(h + params[bk][None, :, None, None], 0.0)
        h = jax.lax.reduce_window(h, -jnp.inf, jax.lax.max,
                                  (1, 1, 2, 2), (1, 1, 2, 2), "VALID")
    feat = h.reshape(h.shape[0], -1)                           # NCHW flatten
    hfc = jnp.maximum(jnp.dot(feat, params["fw1"], precision=hp) + params["fb1"], 0.0)
    return jnp.dot(hfc, params["fw2"], precision=hp) + params["fb2"]


if __name__ == "__main__":
    key = jax.random.PRNGKey(0)
    k_param, k_x = jax.random.split(key)
    input_size = (16, 16)
    params = init_params(k_param, input_size=input_size, num_classes=2)
    x = jax.random.normal(k_x, (2, input_size[0], input_size[1]), jnp.float32)

    kparams = preprocess_params(params, input_size=input_size)  # one-time repack
    out = simple_cnn_forward(kparams, x)
    out = jax.block_until_ready(out)
    assert out.shape == (2, 2) and out.dtype == jnp.float32

    ref = _reference_forward(params, x)
    err = float(jnp.max(jnp.abs(out - ref)))
    assert err < 5e-3, f"kernel/reference mismatch: max abs err = {err}"
    print("KERNEL_OK")
</pallas_src>

<mosaic_0001>
module attributes {stable_mosaic.version = 11 : i64} {
  func.func @_fused_cnn_kernel(%arg0: memref<2x16x54xf32, #tpu.memory_space<vmem>>, %arg1: memref<2x54x128xf32, #tpu.memory_space<vmem>>, %arg2: memref<1x128xf32, #tpu.memory_space<vmem>>, %arg3: memref<2x480x128xf32, #tpu.memory_space<vmem>>, %arg4: memref<1x128xf32, #tpu.memory_space<vmem>>, %arg5: memref<2x576x128xf32, #tpu.memory_space<vmem>>, %arg6: memref<1x128xf32, #tpu.memory_space<vmem>>, %arg7: memref<2x128x128xf32, #tpu.memory_space<vmem>>, %arg8: memref<1x128xf32, #tpu.memory_space<vmem>>, %arg9: memref<128x2xf32, #tpu.memory_space<vmem>>, %arg10: memref<1x2xf32, #tpu.memory_space<vmem>>, %arg11: memref<2x2xf32, #tpu.memory_space<vmem>>, %arg12: memref<2x8x480xf32, #tpu.memory_space<vmem>>, %arg13: memref<2x4x576xf32, #tpu.memory_space<vmem>>) attributes {dimension_semantics = [], scalar_prefetch = 0 : i64, scratch_operands = 2 : i64, tpu.core_type = #tpu.core_type<tc>} {
    %cst = arith.constant 0.000000e+00 : f32
    %0 = vector.broadcast %cst : f32 to vector<2x8x480xf32>
    %c0 = arith.constant 0 : index
    %c0_0 = arith.constant 0 : index
    %c0_1 = arith.constant 0 : index
    %1 = vector.load %arg12[%c0, %c0_0, %c0_1] : memref<2x8x480xf32, #tpu.memory_space<vmem>>, vector<2x8x480xf32>
    tpu.vector_store %arg12[%c0, %c0_0, %c0_1], %0 {strides = array<i32>} : memref<2x8x480xf32, #tpu.memory_space<vmem>>, vector<2x8x480xf32>,
    %cst_2 = arith.constant 0.000000e+00 : f32
    %2 = vector.broadcast %cst_2 : f32 to vector<2x4x576xf32>
    %c0_3 = arith.constant 0 : index
    %c0_4 = arith.constant 0 : index
    %c0_5 = arith.constant 0 : index
    %3 = vector.load %arg13[%c0_3, %c0_4, %c0_5] : memref<2x4x576xf32, #tpu.memory_space<vmem>>, vector<2x4x576xf32>
    tpu.vector_store %arg13[%c0_3, %c0_4, %c0_5], %2 {strides = array<i32>} : memref<2x4x576xf32, #tpu.memory_space<vmem>>, vector<2x4x576xf32>,
    %c0_6 = arith.constant 0 : index
    %c0_7 = arith.constant 0 : index
    %c0_8 = arith.constant 0 : index
    %4 = vector.load %arg0[%c0_6, %c0_7, %c0_8] : memref<2x16x54xf32, #tpu.memory_space<vmem>>, vector<1x16x54xf32>
    %5 = vector.shape_cast %4 : vector<1x16x54xf32> to vector<16x54xf32>
    %c1 = arith.constant 1 : index
    %c0_9 = arith.constant 0 : index
    %c0_10 = arith.constant 0 : index
    %6 = vector.load %arg0[%c1, %c0_9, %c0_10] : memref<2x16x54xf32, #tpu.memory_space<vmem>>, vector<1x16x54xf32>
    %7 = vector.shape_cast %6 : vector<1x16x54xf32> to vector<16x54xf32>
    %c0_11 = arith.constant 0 : index
    %c0_12 = arith.constant 0 : index
    %8 = vector.load %arg2[%c0_11, %c0_12] : memref<1x128xf32, #tpu.memory_space<vmem>>, vector<1x128xf32>
    %c0_13 = arith.constant 0 : index
    %c0_14 = arith.constant 0 : index
    %c0_15 = arith.constant 0 : index
    %9 = vector.load %arg1[%c0_13, %c0_14, %c0_15] : memref<2x54x128xf32, #tpu.memory_space<vmem>>, vector<1x54x128xf32>
    %10 = vector.shape_cast %9 : vector<1x54x128xf32> to vector<54x128xf32>
    %cst_16 = arith.constant dense<0.000000e+00> : vector<16x128xf32>
    %11 = tpu.matmul %5, %10, %cst_16 {dimension_numbers = #tpu.dot_dimension_numbers<[1], [0], [0], [1], [0, 0, 1, 1], [], []>} : vector<16x54xf32>, vector<54x128xf32>, vector<16x128xf32> -> vector<16x128xf32>
    %12 = vector.broadcast %8 : vector<1x128xf32> to vector<16x128xf32>
    %13 = arith.addf %11, %12 : vector<16x128xf32>
    %cst_17 = arith.constant 0.000000e+00 : f32
    %14 = vector.broadcast %cst_17 : f32 to vector<16x128xf32>
    %15 = arith.maximumf %13, %14 : vector<16x128xf32>
    %c1_18 = arith.constant 1 : index
    %c0_19 = arith.constant 0 : index
    %c0_20 = arith.constant 0 : index
    %16 = vector.load %arg1[%c1_18, %c0_19, %c0_20] : memref<2x54x128xf32, #tpu.memory_space<vmem>>, vector<1x54x128xf32>
    %17 = vector.shape_cast %16 : vector<1x54x128xf32> to vector<54x128xf32>
    %cst_21 = arith.constant dense<0.000000e+00> : vector<16x128xf32>
    %18 = tpu.matmul %5, %17, %cst_21 {dimension_numbers = #tpu.dot_dimension_numbers<[1], [0], [0], [1], [0, 0, 1, 1], [], []>} : vector<16x54xf32>, vector<54x128xf32>, vector<16x128xf32> -> vector<16x128xf32>
    %19 = vector.broadcast %8 : vector<1x128xf32> to vector<16x128xf32>
    %20 = arith.addf %18, %19 : vector<16x128xf32>
    %cst_22 = arith.constant 0.000000e+00 : f32
    %21 = vector.broadcast %cst_22 : f32 to vector<16x128xf32>
    %22 = arith.maximumf %20, %21 : vector<16x128xf32>
    %23 = arith.maximumf %15, %22 : vector<16x128xf32>
    %c0_23 = arith.constant 0 : index
    %c0_24 = arith.constant 0 : index
    %c0_25 = arith.constant 0 : index
    %24 = vector.load %arg1[%c0_23, %c0_24, %c0_25] : memref<2x54x128xf32, #tpu.memory_space<vmem>>, vector<1x54x128xf32>
    %25 = vector.shape_cast %24 : vector<1x54x128xf32> to vector<54x128xf32>
    %cst_26 = arith.constant dense<0.000000e+00> : vector<16x128xf32>
    %26 = tpu.matmul %7, %25, %cst_26 {dimension_numbers = #tpu.dot_dimension_numbers<[1], [0], [0], [1], [0, 0, 1, 1], [], []>} : vector<16x54xf32>, vector<54x128xf32>, vector<16x128xf32> -> vector<16x128xf32>
    %27 = vector.broadcast %8 : vector<1x128xf32> to vector<16x128xf32>
    %28 = arith.addf %26, %27 : vector<16x128xf32>
    %cst_27 = arith.constant 0.000000e+00 : f32
    %29 = vector.broadcast %cst_27 : f32 to vector<16x128xf32>
    %30 = arith.maximumf %28, %29 : vector<16x128xf32>
    %31 = arith.maximumf %23, %30 : vector<16x128xf32>
    %c1_28 = arith.constant 1 : index
    %c0_29 = arith.constant 0 : index
    %c0_30 = arith.constant 0 : index
    %32 = vector.load %arg1[%c1_28, %c0_29, %c0_30] : memref<2x54x128xf32, #tpu.memory_space<vmem>>, vector<1x54x128xf32>
    %33 = vector.shape_cast %32 : vector<1x54x128xf32> to vector<54x128xf32>
    %cst_31 = arith.constant dense<0.000000e+00> : vector<16x128xf32>
    %34 = tpu.matmul %7, %33, %cst_31 {dimension_numbers = #tpu.dot_dimension_numbers<[1], [0], [0], [1], [0, 0, 1, 1], [], []>} : vector<16x54xf32>, vector<54x128xf32>, vector<16x128xf32> -> vector<16x128xf32>
    %35 = vector.broadcast %8 : vector<1x128xf32> to vector<16x128xf32>
    %36 = arith.addf %34, %35 : vector<16x128xf32>
    %cst_32 = arith.constant 0.000000e+00 : f32
    %37 = vector.broadcast %cst_32 : f32 to vector<16x128xf32>
    %38 = arith.maximumf %36, %37 : vector<16x128xf32>
    %39 = arith.maximumf %31, %38 : vector<16x128xf32>
    %40 = vector.extract_strided_slice %39 {offsets = [0, 0], sizes = [2, 128], strides = [1, 1]} : vector<16x128xf32> to vector<2x128xf32>
    %c0_33 = arith.constant 0 : index
    %c0_34 = arith.constant 0 : index
    %c176 = arith.constant 176 : index
    %41 = vector.load %arg12[%c0_33, %c0_34, %c176] : memref<2x8x480xf32, #tpu.memory_space<vmem>>, vector<1x2x128xf32>
    %42 = vector.shape_cast %41 : vector<1x2x128xf32> to vector<2x128xf32>
    %43 = vector.shape_cast %40 : vector<2x128xf32> to vector<1x2x128xf32>
    tpu.vector_store %arg12[%c0_33, %c0_34, %c176], %43 {strides = array<i32>} : memref<2x8x480xf32, #tpu.memory_space<vmem>>, vector<1x2x128xf32>,
    %c1_35 = arith.constant 1 : index
    %c0_36 = arith.constant 0 : index
    %c16 = arith.constant 16 : index
    %44 = vector.load %arg12[%c1_35, %c0_36, %c16] : memref<2x8x480xf32, #tpu.memory_space<vmem>>, vector<1x2x128xf32>
    %45 = vector.shape_cast %44 : vector<1x2x128xf32> to vector<2x128xf32>
    %46 = vector.shape_cast %40 : vector<2x128xf32> to vector<1x2x128xf32>
    tpu.vector_store %arg12[%c1_35, %c0_36, %c16], %46 {strides = array<i32>} : memref<2x8x480xf32, #tpu.memory_space<vmem>>, vector<1x2x128xf32>,
    %47 = vector.extract_strided_slice %39 {offsets = [2, 0], sizes = [2, 128], strides = [1, 1]} : vector<16x128xf32> to vector<2x128xf32>
    %c0_37 = arith.constant 0 : index
    %c2 = arith.constant 2 : index
    %c16_38 = arith.constant 16 : index
    %48 = vector.load %arg12[%c0_37, %c2, %c16_38] : memref<2x8x480xf32, #tpu.memory_space<vmem>>, vector<1x2x128xf32>
    %49 = vector.shape_cast %48 : vector<1x2x128xf32> to vector<2x128xf32>
    %50 = vector.shape_cast %47 : vector<2x128xf32> to vector<1x2x128xf32>
    tpu.vector_store %arg12[%c0_37, %c2, %c16_38], %50 {strides = array<i32>} : memref<2x8x480xf32, #tpu.memory_space<vmem>>, vector<1x2x128xf32>,
    %c0_39 = arith.constant 0 : index
    %c0_40 = arith.constant 0 : index
    %c336 = arith.constant 336 : index
    %51 = vector.load %arg12[%c0_39, %c0_40, %c336] : memref<2x8x480xf32, #tpu.memory_space<vmem>>, vector<1x2x128xf32>
    %52 = vector.shape_cast %51 : vector<1x2x128xf32> to vector<2x128xf32>
    %53 = vector.shape_cast %47 : vector<2x128xf32> to vector<1x2x128xf32>
    tpu.vector_store %arg12[%c0_39, %c0_40, %c336], %53 {strides = array<i32>} : memref<2x8x480xf32, #tpu.memory_space<vmem>>, vector<1x2x128xf32>,
    %c1_41 = arith.constant 1 : index
    %c0_42 = arith.constant 0 : index
    %c176_43 = arith.constant 176 : index
    %54 = vector.load %arg12[%c1_41, %c0_42, %c176_43] : memref<2x8x480xf32, #tpu.memory_space<vmem>>, vector<1x2x128xf32>
    %55 = vector.shape_cast %54 : vector<1x2x128xf32> to vector<2x128xf32>
    %56 = vector.shape_cast %47 : vector<2x128xf32> to vector<1x2x128xf32>
    tpu.vector_store %arg12[%c1_41, %c0_42, %c176_43], %56 {strides = array<i32>} : memref<2x8x480xf32, #tpu.memory_space<vmem>>, vector<1x2x128xf32>,
    %57 = vector.extract_strided_slice %39 {offsets = [4, 0], sizes = [2, 128], strides = [1, 1]} : vector<16x128xf32> to vector<2x128xf32>
    %c0_44 = arith.constant 0 : index
    %c2_45 = arith.constant 2 : index
    %c176_46 = arith.constant 176 : index
    %58 = vector.load %arg12[%c0_44, %c2_45, %c176_46] : memref<2x8x480xf32, #tpu.memory_space<vmem>>, vector<1x2x128xf32>
    %59 = vector.shape_cast %58 : vector<1x2x128xf32> to vector<2x128xf32>
    %60 = vector.shape_cast %57 : vector<2x128xf32> to vector<1x2x128xf32>
    tpu.vector_store %arg12[%c0_44, %c2_45, %c176_46], %60 {strides = array<i32>} : memref<2x8x480xf32, #tpu.memory_space<vmem>>, vector<1x2x128xf32>,
    %c1_47 = arith.constant 1 : index
    %c2_48 = arith.constant 2 : index
    %c16_49 = arith.constant 16 : index
    %61 = vector.load %arg12[%c1_47, %c2_48, %c16_49] : memref<2x8x480xf32, #tpu.memory_space<vmem>>, vector<1x2x128xf32>
    %62 = vector.shape_cast %61 : vector<1x2x128xf32> to vector<2x128xf32>
    %63 = vector.shape_cast %57 : vector<2x128xf32> to vector<1x2x128xf32>
    tpu.vector_store %arg12[%c1_47, %c2_48, %c16_49], %63 {strides = array<i32>} : memref<2x8x480xf32, #tpu.memory_space<vmem>>, vector<1x2x128xf32>,
    %c1_50 = arith.constant 1 : index
    %c0_51 = arith.constant 0 : index
    %c336_52 = arith.constant 336 : index
    %64 = vector.load %arg12[%c1_50, %c0_51, %c336_52] : memref<2x8x480xf32, #tpu.memory_space<vmem>>, vector<1x2x128xf32>
    %65 = vector.shape_cast %64 : vector<1x2x128xf32> to vector<2x128xf32>
    %66 = vector.shape_cast %57 : vector<2x128xf32> to vector<1x2x128xf32>
    tpu.vector_store %arg12[%c1_50, %c0_51, %c336_52], %66 {strides = array<i32>} : memref<2x8x480xf32, #tpu.memory_space<vmem>>, vector<1x2x128xf32>,
    %67 = vector.extract_strided_slice %39 {offsets = [6, 0], sizes = [2, 128], strides = [1, 1]} : vector<16x128xf32> to vector<2x128xf32>
    %c0_53 = arith.constant 0 : index
    %c4 = arith.constant 4 : index
    %c16_54 = arith.constant 16 : index
    %68 = vector.load %arg12[%c0_53, %c4, %c16_54] : memref<2x8x480xf32, #tpu.memory_space<vmem>>, vector<1x2x128xf32>
    %69 = vector.shape_cast %68 : vector<1x2x128xf32> to vector<2x128xf32>
    %70 = vector.shape_cast %67 : vector<2x128xf32> to vector<1x2x128xf32>
    tpu.vector_store %arg12[%c0_53, %c4, %c16_54], %70 {strides = array<i32>} : memref<2x8x480xf32, #tpu.memory_space<vmem>>, vector<1x2x128xf32>,
    %c0_55 = arith.constant 0 : index
    %c2_56 = arith.constant 2 : index
    %c336_57 = arith.constant 336 : index
    %71 = vector.load %arg12[%c0_55, %c2_56, %c336_57] : memref<2x8x480xf32, #tpu.memory_space<vmem>>, vector<1x2x128xf32>
    %72 = vector.shape_cast %71 : vector<1x2x128xf32> to vector<2x128xf32>
    %73 = vector.shape_cast %67 : vector<2x128xf32> to vector<1x2x128xf32>
    tpu.vector_store %arg12[%c0_55, %c2_56, %c336_57], %73 {strides = array<i32>} : memref<2x8x480xf32, #tpu.memory_space<vmem>>, vector<1x2x128xf32>,
    %c1_58 = arith.constant 1 : index
    %c2_59 = arith.constant 2 : index
    %c176_60 = arith.constant 176 : index
    %74 = vector.load %arg12[%c1_58, %c2_59, %c176_60] : memref<2x8x480xf32, #tpu.memory_space<vmem>>, vector<1x2x128xf32>
    %75 = vector.shape_cast %74 : vector<1x2x128xf32> to vector<2x128xf32>
    %76 = vector.shape_cast %67 : vector<2x128xf32> to vector<1x2x128xf32>
    tpu.vector_store %arg12[%c1_58, %c2_59, %c176_60], %76 {strides = array<i32>} : memref<2x8x480xf32, #tpu.memory_space<vmem>>, vector<1x2x128xf32>,
    %77 = vector.extract_strided_slice %39 {offsets = [8, 0], sizes = [2, 128], strides = [1, 1]} : vector<16x128xf32> to vector<2x128xf32>
    %c0_61 = arith.constant 0 : index
    %c4_62 = arith.constant 4 : index
    %c176_63 = arith.constant 176 : index
    %78 = vector.load %arg12[%c0_61, %c4_62, %c176_63] : memref<2x8x480xf32, #tpu.memory_space<vmem>>, vector<1x2x128xf32>
    %79 = vector.shape_cast %78 : vector<1x2x128xf32> to vector<2x128xf32>
    %80 = vector.shape_cast %77 : vector<2x128xf32> to vector<1x2x128xf32>
    tpu.vector_store %arg12[%c0_61, %c4_62, %c176_63], %80 {strides = array<i32>} : memref<2x8x480xf32, #tpu.memory_space<vmem>>, vector<1x2x128xf32>,
    %c1_64 = arith.constant 1 : index
    %c4_65 = arith.constant 4 : index
    %c16_66 = arith.constant 16 : index
    %81 = vector.load %arg12[%c1_64, %c4_65, %c16_66] : memref<2x8x480xf32, #tpu.memory_space<vmem>>, vector<1x2x128xf32>
    %82 = vector.shape_cast %81 : vector<1x2x128xf32> to vector<2x128xf32>
    %83 = vector.shape_cast %77 : vector<2x128xf32> to vector<1x2x128xf32>
    tpu.vector_store %arg12[%c1_64, %c4_65, %c16_66], %83 {strides = array<i32>} : memref<2x8x480xf32, #tpu.memory_space<vmem>>, vector<1x2x128xf32>,
    %c1_67 = arith.constant 1 : index
    %c2_68 = arith.constant 2 : index
    %c336_69 = arith.constant 336 : index
    %84 = vector.load %arg12[%c1_67, %c2_68, %c336_69] : memref<2x8x480xf32, #tpu.memory_space<vmem>>, vector<1x2x128xf32>
    %85 = vector.shape_cast %84 : vector<1x2x128xf32> to vector<2x128xf32>
    %86 = vector.shape_cast %77 : vector<2x128xf32> to vector<1x2x128xf32>
    tpu.vector_store %arg12[%c1_67, %c2_68, %c336_69], %86 {strides = array<i32>} : memref<2x8x480xf32, #tpu.memory_space<vmem>>, vector<1x2x128xf32>,
    %87 = vector.extract_strided_slice %39 {offsets = [10, 0], sizes = [2, 128], strides = [1, 1]} : vector<16x128xf32> to vector<2x128xf32>
    %c0_70 = arith.constant 0 : index
    %c6 = arith.constant 6 : index
    %c16_71 = arith.constant 16 : index
    %88 = vector.load %arg12[%c0_70, %c6, %c16_71] : memref<2x8x480xf32, #tpu.memory_space<vmem>>, vector<1x2x128xf32>
    %89 = vector.shape_cast %88 : vector<1x2x128xf32> to vector<2x128xf32>
    %90 = vector.shape_cast %87 : vector<2x128xf32> to vector<1x2x128xf32>
    tpu.vector_store %arg12[%c0_70, %c6, %c16_71], %90 {strides = array<i32>} : memref<2x8x480xf32, #tpu.memory_space<vmem>>, vector<1x2x128xf32>,
    %c0_72 = arith.constant 0 : index
    %c4_73 = arith.constant 4 : index
    %c336_74 = arith.constant 336 : index
    %91 = vector.load %arg12[%c0_72, %c4_73, %c336_74] : memref<2x8x480xf32, #tpu.memory_space<vmem>>, vector<1x2x128xf32>
    %92 = vector.shape_cast %91 : vector<1x2x128xf32> to vector<2x128xf32>
    %93 = vector.shape_cast %87 : vector<2x128xf32> to vector<1x2x128xf32>
    tpu.vector_store %arg12[%c0_72, %c4_73, %c336_74], %93 {strides = array<i32>} : memref<2x8x480xf32, #tpu.memory_space<vmem>>, vector<1x2x128xf32>,
    %c1_75 = arith.constant 1 : index
    %c4_76 = arith.constant 4 : index
    %c176_77 = arith.constant 176 : index
    %94 = vector.load %arg12[%c1_75, %c4_76, %c176_77] : memref<2x8x480xf32, #tpu.memory_space<vmem>>, vector<1x2x128xf32>
    %95 = vector.shape_cast %94 : vector<1x2x128xf32> to vector<2x128xf32>
    %96 = vector.shape_cast %87 : vector<2x128xf32> to vector<1x2x128xf32>
    tpu.vector_store %arg12[%c1_75, %c4_76, %c176_77], %96 {strides = array<i32>} : memref<2x8x480xf32, #tpu.memory_space<vmem>>, vector<1x2x128xf32>,
    %97 = vector.extract_strided_slice %39 {offsets = [12, 0], sizes = [2, 128], strides = [1, 1]} : vector<16x128xf32> to vector<2x128xf32>
    %c0_78 = arith.constant 0 : index
    %c6_79 = arith.constant 6 : index
    %c176_80 = arith.constant 176 : index
    %98 = vector.load %arg12[%c0_78, %c6_79, %c176_80] : memref<2x8x480xf32, #tpu.memory_space<vmem>>, vector<1x2x128xf32>
    %99 = vector.shape_cast %98 : vector<1x2x128xf32> to vector<2x128xf32>
    %100 = vector.shape_cast %97 : vector<2x128xf32> to vector<1x2x128xf32>
    tpu.vector_store %arg12[%c0_78, %c6_79, %c176_80], %100 {strides = array<i32>} : memref<2x8x480xf32, #tpu.memory_space<vmem>>, vector<1x2x128xf32>,
    %c1_81 = arith.constant 1 : index
    %c6_82 = arith.constant 6 : index
    %c16_83 = arith.constant 16 : index
    %101 = vector.load %arg12[%c1_81, %c6_82, %c16_83] : memref<2x8x480xf32, #tpu.memory_space<vmem>>, vector<1x2x128xf32>
    %102 = vector.shape_cast %101 : vector<1x2x128xf32> to vector<2x128xf32>
    %103 = vector.shape_cast %97 : vector<2x128xf32> to vector<1x2x128xf32>
    tpu.vector_store %arg12[%c1_81, %c6_82, %c16_83], %103 {strides = array<i32>} : memref<2x8x480xf32, #tpu.memory_space<vmem>>, vector<1x2x128xf32>,
    %c1_84 = arith.constant 1 : index
    %c4_85 = arith.constant 4 : index
    %c336_86 = arith.constant 336 : index
    %104 = vector.load %arg12[%c1_84, %c4_85, %c336_86] : memref<2x8x480xf32, #tpu.memory_space<vmem>>, vector<1x2x128xf32>
    %105 = vector.shape_cast %104 : vector<1x2x128xf32> to vector<2x128xf32>
    %106 = vector.shape_cast %97 : vector<2x128xf32> to vector<1x2x128xf32>
    tpu.vector_store %arg12[%c1_84, %c4_85, %c336_86], %106 {strides = array<i32>} : memref<2x8x480xf32, #tpu.memory_space<vmem>>, vector<1x2x128xf32>,
    %107 = vector.extract_strided_slice %39 {offsets = [14, 0], sizes = [2, 128], strides = [1, 1]} : vector<16x128xf32> to vector<2x128xf32>
    %c0_87 = arith.constant 0 : index
    %c6_88 = arith.constant 6 : index
    %c336_89 = arith.constant 336 : index
    %108 = vector.load %arg12[%c0_87, %c6_88, %c336_89] : memref<2x8x480xf32, #tpu.memory_space<vmem>>, vector<1x2x128xf32>
    %109 = vector.shape_cast %108 : vector<1x2x128xf32> to vector<2x128xf32>
    %110 = vector.shape_cast %107 : vector<2x128xf32> to vector<1x2x128xf32>
    tpu.vector_store %arg12[%c0_87, %c6_88, %c336_89], %110 {strides = array<i32>} : memref<2x8x480xf32, #tpu.memory_space<vmem>>, vector<1x2x128xf32>,
    %c1_90 = arith.constant 1 : index
    %c6_91 = arith.constant 6 : index
    %c176_92 = arith.constant 176 : index
    %111 = vector.load %arg12[%c1_90, %c6_91, %c176_92] : memref<2x8x480xf32, #tpu.memory_space<vmem>>, vector<1x2x128xf32>
    %112 = vector.shape_cast %111 : vector<1x2x128xf32> to vector<2x128xf32>
    %113 = vector.shape_cast %107 : vector<2x128xf32> to vector<1x2x128xf32>
    tpu.vector_store %arg12[%c1_90, %c6_91, %c176_92], %113 {strides = array<i32>} : memref<2x8x480xf32, #tpu.memory_space<vmem>>, vector<1x2x128xf32>,
    %c0_93 = arith.constant 0 : index
    %c0_94 = arith.constant 0 : index
    %c0_95 = arith.constant 0 : index
    %114 = vector.load %arg12[%c0_93, %c0_94, %c0_95] : memref<2x8x480xf32, #tpu.memory_space<vmem>>, vector<1x8x480xf32>
    %115 = vector.shape_cast %114 : vector<1x8x480xf32> to vector<8x480xf32>
    %c1_96 = arith.constant 1 : index
    %c0_97 = arith.constant 0 : index
    %c0_98 = arith.constant 0 : index
    %116 = vector.load %arg12[%c1_96, %c0_97, %c0_98] : memref<2x8x480xf32, #tpu.memory_space<vmem>>, vector<1x8x480xf32>
    %117 = vector.shape_cast %116 : vector<1x8x480xf32> to vector<8x480xf32>
    %c0_99 = arith.constant 0 : index
    %c0_100 = arith.constant 0 : index
    %118 = vector.load %arg4[%c0_99, %c0_100] : memref<1x128xf32, #tpu.memory_space<vmem>>, vector<1x128xf32>
    %c0_101 = arith.constant 0 : index
    %c0_102 = arith.constant 0 : index
    %c0_103 = arith.constant 0 : index
    %119 = vector.load %arg3[%c0_101, %c0_102, %c0_103] : memref<2x480x128xf32, #tpu.memory_space<vmem>>, vector<1x480x128xf32>
    %120 = vector.shape_cast %119 : vector<1x480x128xf32> to vector<480x128xf32>
    %cst_104 = arith.constant dense<0.000000e+00> : vector<8x128xf32>
    %121 = tpu.matmul %115, %120, %cst_104 {dimension_numbers = #tpu.dot_dimension_numbers<[1], [0], [0], [1], [0, 0, 1, 1], [], []>} : vector<8x480xf32>, vector<480x128xf32>, vector<8x128xf32> -> vector<8x128xf32>
    %122 = vector.broadcast %118 : vector<1x128xf32> to vector<8x128xf32>
    %123 = arith.addf %121, %122 : vector<8x128xf32>
    %cst_105 = arith.constant 0.000000e+00 : f32
    %124 = vector.broadcast %cst_105 : f32 to vector<8x128xf32>
    %125 = arith.maximumf %123, %124 : vector<8x128xf32>
    %c1_106 = arith.constant 1 : index
    %c0_107 = arith.constant 0 : index
    %c0_108 = arith.constant 0 : index
    %126 = vector.load %arg3[%c1_106, %c0_107, %c0_108] : memref<2x480x128xf32, #tpu.memory_space<vmem>>, vector<1x480x128xf32>
    %127 = vector.shape_cast %126 : vector<1x480x128xf32> to vector<480x128xf32>
    %cst_109 = arith.constant dense<0.000000e+00> : vector<8x128xf32>
    %128 = tpu.matmul %115, %127, %cst_109 {dimension_numbers = #tpu.dot_dimension_numbers<[1], [0], [0], [1], [0, 0, 1, 1], [], []>} : vector<8x480xf32>, vector<480x128xf32>, vector<8x128xf32> -> vector<8x128xf32>
    %129 = vector.broadcast %118 : vector<1x128xf32> to vector<8x128xf32>
    %130 = arith.addf %128, %129 : vector<8x128xf32>
    %cst_110 = arith.constant 0.000000e+00 : f32
    %131 = vector.broadcast %cst_110 : f32 to vector<8x128xf32>
    %132 = arith.maximumf %130, %131 : vector<8x128xf32>
    %133 = arith.maximumf %125, %132 : vector<8x128xf32>
    %c0_111 = arith.constant 0 : index
    %c0_112 = arith.constant 0 : index
    %c0_113 = arith.constant 0 : index
    %134 = vector.load %arg3[%c0_111, %c0_112, %c0_113] : memref<2x480x128xf32, #tpu.memory_space<vmem>>, vector<1x480x128xf32>
    %135 = vector.shape_cast %134 : vector<1x480x128xf32> to vector<480x128xf32>
    %cst_114 = arith.constant dense<0.000000e+00> : vector<8x128xf32>
    %136 = tpu.matmul %117, %135, %cst_114 {dimension_numbers = #tpu.dot_dimension_numbers<[1], [0], [0], [1], [0, 0, 1, 1], [], []>} : vector<8x480xf32>, vector<480x128xf32>, vector<8x128xf32> -> vector<8x128xf32>
    %137 = vector.broadcast %118 : vector<1x128xf32> to vector<8x128xf32>
    %138 = arith.addf %136, %137 : vector<8x128xf32>
    %cst_115 = arith.constant 0.000000e+00 : f32
    %139 = vector.broadcast %cst_115 : f32 to vector<8x128xf32>
    %140 = arith.maximumf %138, %139 : vector<8x128xf32>
    %141 = arith.maximumf %133, %140 : vector<8x128xf32>
    %c1_116 = arith.constant 1 : index
    %c0_117 = arith.constant 0 : index
    %c0_118 = arith.constant 0 : index
    %142 = vector.load %arg3[%c1_116, %c0_117, %c0_118] : memref<2x480x128xf32, #tpu.memory_space<vmem>>, vector<1x480x128xf32>
    %143 = vector.shape_cast %142 : vector<1x480x128xf32> to vector<480x128xf32>
    %cst_119 = arith.constant dense<0.000000e+00> : vector<8x128xf32>
    %144 = tpu.matmul %117, %143, %cst_119 {dimension_numbers = #tpu.dot_dimension_numbers<[1], [0], [0], [1], [0, 0, 1, 1], [], []>} : vector<8x480xf32>, vector<480x128xf32>, vector<8x128xf32> -> vector<8x128xf32>
    %145 = vector.broadcast %118 : vector<1x128xf32> to vector<8x128xf32>
    %146 = arith.addf %144, %145 : vector<8x128xf32>
    %cst_120 = arith.constant 0.000000e+00 : f32
    %147 = vector.broadcast %cst_120 : f32 to vector<8x128xf32>
    %148 = arith.maximumf %146, %147 : vector<8x128xf32>
    %149 = arith.maximumf %141, %148 : vector<8x128xf32>
    %150 = vector.extract_strided_slice %149 {offsets = [0, 0], sizes = [2, 128], strides = [1, 1]} : vector<8x128xf32> to vector<2x128xf32>
    %c0_121 = arith.constant 0 : index
    %c0_122 = arith.constant 0 : index
    %c224 = arith.constant 224 : index
    %151 = vector.load %arg13[%c0_121, %c0_122, %c224] : memref<2x4x576xf32, #tpu.memory_space<vmem>>, vector<1x2x128xf32>
    %152 = vector.shape_cast %151 : vector<1x2x128xf32> to vector<2x128xf32>
    %153 = vector.shape_cast %150 : vector<2x128xf32> to vector<1x2x128xf32>
    tpu.vector_store %arg13[%c0_121, %c0_122, %c224], %153 {strides = array<i32>} : memref<2x4x576xf32, #tpu.memory_space<vmem>>, vector<1x2x128xf32>,
    %c1_123 = arith.constant 1 : index
    %c0_124 = arith.constant 0 : index
    %c32 = arith.constant 32 : index
    %154 = vector.load %arg13[%c1_123, %c0_124, %c32] : memref<2x4x576xf32, #tpu.memory_space<vmem>>, vector<1x2x128xf32>
    %155 = vector.shape_cast %154 : vector<1x2x128xf32> to vector<2x128xf32>
    %156 = vector.shape_cast %150 : vector<2x128xf32> to vector<1x2x128xf32>
    tpu.vector_store %arg13[%c1_123, %c0_124, %c32], %156 {strides = array<i32>} : memref<2x4x576xf32, #tpu.memory_space<vmem>>, vector<1x2x128xf32>,
    %157 = vector.extract_strided_slice %149 {offsets = [2, 0], sizes = [2, 128], strides = [1, 1]} : vector<8x128xf32> to vector<2x128xf32>
    %c0_125 = arith.constant 0 : index
    %c2_126 = arith.constant 2 : index
    %c32_127 = arith.constant 32 : index
    %158 = vector.load %arg13[%c0_125, %c2_126, %c32_127] : memref<2x4x576xf32, #tpu.memory_space<vmem>>, vector<1x2x128xf32>
    %159 = vector.shape_cast %158 : vector<1x2x128xf32> to vector<2x128xf32>
    %160 = vector.shape_cast %157 : vector<2x128xf32> to vector<1x2x128xf32>
    tpu.vector_store %arg13[%c0_125, %c2_126, %c32_127], %160 {strides = array<i32>} : memref<2x4x576xf32, #tpu.memory_space<vmem>>, vector<1x2x128xf32>,
    %c0_128 = arith.constant 0 : index
    %c0_129 = arith.constant 0 : index
    %c416 = arith.constant 416 : index
    %161 = vector.load %arg13[%c0_128, %c0_129, %c416] : memref<2x4x576xf32, #tpu.memory_space<vmem>>, vector<1x2x128xf32>
    %162 = vector.shape_cast %161 : vector<1x2x128xf32> to vector<2x128xf32>
    %163 = vector.shape_cast %157 : vector<2x128xf32> to vector<1x2x128xf32>
    tpu.vector_store %arg13[%c0_128, %c0_129, %c416], %163 {strides = array<i32>} : memref<2x4x576xf32, #tpu.memory_space<vmem>>, vector<1x2x128xf32>,
    %c1_130 = arith.constant 1 : index
    %c0_131 = arith.constant 0 : index
    %c224_132 = arith.constant 224 : index
    %164 = vector.load %arg13[%c1_130, %c0_131, %c224_132] : memref<2x4x576xf32, #tpu.memory_space<vmem>>, vector<1x2x128xf32>
    %165 = vector.shape_cast %164 : vector<1x2x128xf32> to vector<2x128xf32>
    %166 = vector.shape_cast %157 : vector<2x128xf32> to vector<1x2x128xf32>
    tpu.vector_store %arg13[%c1_130, %c0_131, %c224_132], %166 {strides = array<i32>} : memref<2x4x576xf32, #tpu.memory_space<vmem>>, vector<1x2x128xf32>,
    %167 = vector.extract_strided_slice %149 {offsets = [4, 0], sizes = [2, 128], strides = [1, 1]} : vector<8x128xf32> to vector<2x128xf32>
    %c0_133 = arith.constant 0 : index
    %c2_134 = arith.constant 2 : index
    %c224_135 = arith.constant 224 : index
    %168 = vector.load %arg13[%c0_133, %c2_134, %c224_135] : memref<2x4x576xf32, #tpu.memory_space<vmem>>, vector<1x2x128xf32>
    %169 = vector.shape_cast %168 : vector<1x2x128xf32> to vector<2x128xf32>
    %170 = vector.shape_cast %167 : vector<2x128xf32> to vector<1x2x128xf32>
    tpu.vector_store %arg13[%c0_133, %c2_134, %c224_135], %170 {strides = array<i32>} : memref<2x4x576xf32, #tpu.memory_space<vmem>>, vector<1x2x128xf32>,
    %c1_136 = arith.constant 1 : index
    %c2_137 = arith.constant 2 : index
    %c32_138 = arith.constant 32 : index
    %171 = vector.load %arg13[%c1_136, %c2_137, %c32_138] : memref<2x4x576xf32, #tpu.memory_space<vmem>>, vector<1x2x128xf32>
    %172 = vector.shape_cast %171 : vector<1x2x128xf32> to vector<2x128xf32>
    %173 = vector.shape_cast %167 : vector<2x128xf32> to vector<1x2x128xf32>
    tpu.vector_store %arg13[%c1_136, %c2_137, %c32_138], %173 {strides = array<i32>} : memref<2x4x576xf32, #tpu.memory_space<vmem>>, vector<1x2x128xf32>,
    %c1_139 = arith.constant 1 : index
    %c0_140 = arith.constant 0 : index
    %c416_141 = arith.constant 416 : index
    %174 = vector.load %arg13[%c1_139, %c0_140, %c416_141] : memref<2x4x576xf32, #tpu.memory_space<vmem>>, vector<1x2x128xf32>
    %175 = vector.shape_cast %174 : vector<1x2x128xf32> to vector<2x128xf32>
    %176 = vector.shape_cast %167 : vector<2x128xf32> to vector<1x2x128xf32>
    tpu.vector_store %arg13[%c1_139, %c0_140, %c416_141], %176 {strides = array<i32>} : memref<2x4x576xf32, #tpu.memory_space<vmem>>, vector<1x2x128xf32>,
    %177 = vector.extract_strided_slice %149 {offsets = [6, 0], sizes = [2, 128], strides = [1, 1]} : vector<8x128xf32> to vector<2x128xf32>
    %c0_142 = arith.constant 0 : index
    %c2_143 = arith.constant 2 : index
    %c416_144 = arith.constant 416 : index
    %178 = vector.load %arg13[%c0_142, %c2_143, %c416_144] : memref<2x4x576xf32, #tpu.memory_space<vmem>>, vector<1x2x128xf32>
    %179 = vector.shape_cast %178 : vector<1x2x128xf32> to vector<2x128xf32>
    %180 = vector.shape_cast %177 : vector<2x128xf32> to vector<1x2x128xf32>
    tpu.vector_store %arg13[%c0_142, %c2_143, %c416_144], %180 {strides = array<i32>} : memref<2x4x576xf32, #tpu.memory_space<vmem>>, vector<1x2x128xf32>,
    %c1_145 = arith.constant 1 : index
    %c2_146 = arith.constant 2 : index
    %c224_147 = arith.constant 224 : index
    %181 = vector.load %arg13[%c1_145, %c2_146, %c224_147] : memref<2x4x576xf32, #tpu.memory_space<vmem>>, vector<1x2x128xf32>
    %182 = vector.shape_cast %181 : vector<1x2x128xf32> to vector<2x128xf32>
    %183 = vector.shape_cast %177 : vector<2x128xf32> to vector<1x2x128xf32>
    tpu.vector_store %arg13[%c1_145, %c2_146, %c224_147], %183 {strides = array<i32>} : memref<2x4x576xf32, #tpu.memory_space<vmem>>, vector<1x2x128xf32>,
    %c0_148 = arith.constant 0 : index
    %c0_149 = arith.constant 0 : index
    %c0_150 = arith.constant 0 : index
    %184 = vector.load %arg13[%c0_148, %c0_149, %c0_150] : memref<2x4x576xf32, #tpu.memory_space<vmem>>, vector<1x4x576xf32>
    %185 = vector.shape_cast %184 : vector<1x4x576xf32> to vector<4x576xf32>
    %c1_151 = arith.constant 1 : index
    %c0_152 = arith.constant 0 : index
    %c0_153 = arith.constant 0 : index
    %186 = vector.load %arg13[%c1_151, %c0_152, %c0_153] : memref<2x4x576xf32, #tpu.memory_space<vmem>>, vector<1x4x576xf32>
    %187 = vector.shape_cast %186 : vector<1x4x576xf32> to vector<4x576xf32>
    %c0_154 = arith.constant 0 : index
    %c0_155 = arith.constant 0 : index
    %188 = vector.load %arg6[%c0_154, %c0_155] : memref<1x128xf32, #tpu.memory_space<vmem>>, vector<1x128xf32>
    %c0_156 = arith.constant 0 : index
    %c0_157 = arith.constant 0 : index
    %c0_158 = arith.constant 0 : index
    %189 = vector.load %arg5[%c0_156, %c0_157, %c0_158] : memref<2x576x128xf32, #tpu.memory_space<vmem>>, vector<1x576x128xf32>
    %190 = vector.shape_cast %189 : vector<1x576x128xf32> to vector<576x128xf32>
    %cst_159 = arith.constant dense<0.000000e+00> : vector<4x128xf32>
    %191 = tpu.matmul %185, %190, %cst_159 {dimension_numbers = #tpu.dot_dimension_numbers<[1], [0], [0], [1], [0, 0, 1, 1], [], []>} : vector<4x576xf32>, vector<576x128xf32>, vector<4x128xf32> -> vector<4x128xf32>
    %192 = vector.broadcast %188 : vector<1x128xf32> to vector<4x128xf32>
    %193 = arith.addf %191, %192 : vector<4x128xf32>
    %cst_160 = arith.constant 0.000000e+00 : f32
    %194 = vector.broadcast %cst_160 : f32 to vector<4x128xf32>
    %195 = arith.maximumf %193, %194 : vector<4x128xf32>
    %c1_161 = arith.constant 1 : index
    %c0_162 = arith.constant 0 : index
    %c0_163 = arith.constant 0 : index
    %196 = vector.load %arg5[%c1_161, %c0_162, %c0_163] : memref<2x576x128xf32, #tpu.memory_space<vmem>>, vector<1x576x128xf32>
    %197 = vector.shape_cast %196 : vector<1x576x128xf32> to vector<576x128xf32>
    %cst_164 = arith.constant dense<0.000000e+00> : vector<4x128xf32>
    %198 = tpu.matmul %185, %197, %cst_164 {dimension_numbers = #tpu.dot_dimension_numbers<[1], [0], [0], [1], [0, 0, 1, 1], [], []>} : vector<4x576xf32>, vector<576x128xf32>, vector<4x128xf32> -> vector<4x128xf32>
    %199 = vector.broadcast %188 : vector<1x128xf32> to vector<4x128xf32>
    %200 = arith.addf %198, %199 : vector<4x128xf32>
    %cst_165 = arith.constant 0.000000e+00 : f32
    %201 = vector.broadcast %cst_165 : f32 to vector<4x128xf32>
    %202 = arith.maximumf %200, %201 : vector<4x128xf32>
    %203 = arith.maximumf %195, %202 : vector<4x128xf32>
    %c0_166 = arith.constant 0 : index
    %c0_167 = arith.constant 0 : index
    %c0_168 = arith.constant 0 : index
    %204 = vector.load %arg5[%c0_166, %c0_167, %c0_168] : memref<2x576x128xf32, #tpu.memory_space<vmem>>, vector<1x576x128xf32>
    %205 = vector.shape_cast %204 : vector<1x576x128xf32> to vector<576x128xf32>
    %cst_169 = arith.constant dense<0.000000e+00> : vector<4x128xf32>
    %206 = tpu.matmul %187, %205, %cst_169 {dimension_numbers = #tpu.dot_dimension_numbers<[1], [0], [0], [1], [0, 0, 1, 1], [], []>} : vector<4x576xf32>, vector<576x128xf32>, vector<4x128xf32> -> vector<4x128xf32>
    %207 = vector.broadcast %188 : vector<1x128xf32> to vector<4x128xf32>
    %208 = arith.addf %206, %207 : vector<4x128xf32>
    %cst_170 = arith.constant 0.000000e+00 : f32
    %209 = vector.broadcast %cst_170 : f32 to vector<4x128xf32>
    %210 = arith.maximumf %208, %209 : vector<4x128xf32>
    %211 = arith.maximumf %203, %210 : vector<4x128xf32>
    %c1_171 = arith.constant 1 : index
    %c0_172 = arith.constant 0 : index
    %c0_173 = arith.constant 0 : index
    %212 = vector.load %arg5[%c1_171, %c0_172, %c0_173] : memref<2x576x128xf32, #tpu.memory_space<vmem>>, vector<1x576x128xf32>
    %213 = vector.shape_cast %212 : vector<1x576x128xf32> to vector<576x128xf32>
    %cst_174 = arith.constant dense<0.000000e+00> : vector<4x128xf32>
    %214 = tpu.matmul %187, %213, %cst_174 {dimension_numbers = #tpu.dot_dimension_numbers<[1], [0], [0], [1], [0, 0, 1, 1], [], []>} : vector<4x576xf32>, vector<576x128xf32>, vector<4x128xf32> -> vector<4x128xf32>
    %215 = vector.broadcast %188 : vector<1x128xf32> to vector<4x128xf32>
    %216 = arith.addf %214, %215 : vector<4x128xf32>
    %cst_175 = arith.constant 0.000000e+00 : f32
    %217 = vector.broadcast %cst_175 : f32 to vector<4x128xf32>
    %218 = arith.maximumf %216, %217 : vector<4x128xf32>
    %219 = arith.maximumf %211, %218 : vector<4x128xf32>
    %c0_176 = arith.constant 0 : index
    %c0_177 = arith.constant 0 : index
    %220 = vector.load %arg8[%c0_176, %c0_177] : memref<1x128xf32, #tpu.memory_space<vmem>>, vector<1x128xf32>
    %221 = vector.extract_strided_slice %219 {offsets = [0, 0], sizes = [2, 128], strides = [1, 1]} : vector<4x128xf32> to vector<2x128xf32>
    %c0_178 = arith.constant 0 : index
    %c0_179 = arith.constant 0 : index
    %c0_180 = arith.constant 0 : index
    %222 = vector.load %arg7[%c0_178, %c0_179, %c0_180] : memref<2x128x128xf32, #tpu.memory_space<vmem>>, vector<1x128x128xf32>
    %223 = vector.shape_cast %222 : vector<1x128x128xf32> to vector<128x128xf32>
    %cst_181 = arith.constant dense<0.000000e+00> : vector<2x128xf32>
    %224 = tpu.matmul %221, %223, %cst_181 {dimension_numbers = #tpu.dot_dimension_numbers<[1], [0], [0], [1], [0, 0, 1, 1], [], []>} : vector<2x128xf32>, vector<128x128xf32>, vector<2x128xf32> -> vector<2x128xf32>
    %225 = vector.broadcast %220 : vector<1x128xf32> to vector<2x128xf32>
    %226 = arith.addf %225, %224 : vector<2x128xf32>
    %227 = vector.extract_strided_slice %219 {offsets = [2, 0], sizes = [2, 128], strides = [1, 1]} : vector<4x128xf32> to vector<2x128xf32>
    %c1_182 = arith.constant 1 : index
    %c0_183 = arith.constant 0 : index
    %c0_184 = arith.constant 0 : index
    %228 = vector.load %arg7[%c1_182, %c0_183, %c0_184] : memref<2x128x128xf32, #tpu.memory_space<vmem>>, vector<1x128x128xf32>
    %229 = vector.shape_cast %228 : vector<1x128x128xf32> to vector<128x128xf32>
    %cst_185 = arith.constant dense<0.000000e+00> : vector<2x128xf32>
    %230 = tpu.matmul %227, %229, %cst_185 {dimension_numbers = #tpu.dot_dimension_numbers<[1], [0], [0], [1], [0, 0, 1, 1], [], []>} : vector<2x128xf32>, vector<128x128xf32>, vector<2x128xf32> -> vector<2x128xf32>
    %231 = arith.addf %226, %230 : vector<2x128xf32>
    %cst_186 = arith.constant 0.000000e+00 : f32
    %232 = vector.broadcast %cst_186 : f32 to vector<2x128xf32>
    %233 = arith.maximumf %231, %232 : vector<2x128xf32>
    %c0_187 = arith.constant 0 : index
    %c0_188 = arith.constant 0 : index
    %234 = vector.load %arg9[%c0_187, %c0_188] : memref<128x2xf32, #tpu.memory_space<vmem>>, vector<128x2xf32>
    %cst_189 = arith.constant dense<0.000000e+00> : vector<2x2xf32>
    %235 = tpu.matmul %233, %234, %cst_189 {dimension_numbers = #tpu.dot_dimension_numbers<[1], [0], [0], [1], [0, 0, 1, 1], [], []>} : vector<2x128xf32>, vector<128x2xf32>, vector<2x2xf32> -> vector<2x2xf32>
    %c0_190 = arith.constant 0 : index
    %c0_191 = arith.constant 0 : index
    %236 = vector.load %arg10[%c0_190, %c0_191] : memref<1x2xf32, #tpu.memory_space<vmem>>, vector<1x2xf32>
    %237 = vector.broadcast %236 : vector<1x2xf32> to vector<2x2xf32>
    %238 = arith.addf %235, %237 : vector<2x2xf32>
    %c0_192 = arith.constant 0 : index
    %c0_193 = arith.constant 0 : index
    %239 = vector.load %arg11[%c0_192, %c0_193] : memref<2x2xf32, #tpu.memory_space<vmem>>, vector<2x2xf32>
    tpu.vector_store %arg11[%c0_192, %c0_193], %238 {strides = array<i32>} : memref<2x2xf32, #tpu.memory_space<vmem>>, vector<2x2xf32>,
    return
  }
}

</mosaic_0001>

<bundles_post_ra>
// kernel: simple_cnn_forward.1
= control target key start
LH: loop header
LB: loop body
LE: loop exit
PB: predicated region body
PF: predicated region fallthrough
CT: control target
= control target key end

     0   :  { %16 = vsyncpa [#allocation5], 0  ;;  %s5475_s0 = inlined_call_operand.vmem [shape: f32[2,16,54], index: 0, kind: input, shape index: {}]   ;;  %s5476_s1 = inlined_call_operand.vmem [shape: f32[2,54,128], index: 1, kind: input, shape index: {}]   ;;  %s5477_s2 = inlined_call_operand.vmem [shape: f32[1,128], index: 2, kind: input, shape index: {}]   ;;  %s5478_s3 = inlined_call_operand.hbm [shape: f32[2,480,128], index: 3, kind: input, shape index: {}]   ;;  %s5479_s4 = inlined_call_operand.vmem [shape: f32[1,128], index: 4, kind: input, shape index: {}]   ;;  %s5480_s5 = inlined_call_operand.hbm [shape: f32[2,576,128], index: 5, kind: input, shape index: {}]   ;;  %s5481_s6 = inlined_call_operand.vmem [shape: f32[1,128], index: 6, kind: input, shape index: {}]   ;;  %s5482_s7 = inlined_call_operand.vmem [shape: f32[2,128,128], index: 7, kind: input, shape index: {}]   ;;  %s5483_s8 = inlined_call_operand.vmem [shape: f32[1,128], index: 8, kind: input, shape index: {}]   ;;  %s5484_s9 = inlined_call_operand.vmem [shape: f32[128,2], index: 9, kind: input, shape index: {}]   ;;  %s5485_s10 = inlined_call_operand.vmem [shape: f32[1,2], index: 10, kind: input, shape index: {}]   ;;  %s5486_s11 = inlined_call_operand.hbm [shape: f32[2,2], index: 11, kind: output, shape index: {}]  }
   0x1   :  { %17 = vsyncpa [#allocation8], 0 }
   0x2   :  { %18 = vsyncpa [#allocation6], 0  ;;  %s4315_s17 = smov [#allocation4]   ;;  %s4243_s21 = scalar_lea.hbm %s5478_s3, 15360 }
   0x3   :  { %s30_s18 = sshll.u32 %s4315_s17, 4  ;;  %p4244_p0 = scmp.ne.s32.totalorder %s5478_s3, %s4243_s21  ;;  %s31_s18 = int_to_ptr.vmem [resolvable:$true] %s30_s18 }
   0x4   :  { %p4247_p1 = scmp.lt.u32.totalorder %s4243_s21, %s5478_s3 }
   0x6   :  { %p4249_p2 = pnand %p4247_p1, %p4244_p0 }
   0x8   :  { %4252 = shalt.err (!%p4249_p2)
}
   0x9   :  { %s4253_s26 = scalar_lea.vmem %s31_s18, 15360  ;;  %p4258_p4 = scmp.lt.s32.totalorder %s31_s18, %s31_s18 }
   0xa   :  { %p4254_p3 = scmp.ne.s32.totalorder %s31_s18, %s4253_s26  ;;  %p4259_p5 = scmp.lt.s32.totalorder %s4253_s26, %s4253_s26 }
   0xc   :  { %p4260_p6 = por %p4259_p5, %p4258_p4 }
   0xe   :  { %p4261_p7 = pnand %p4260_p6, %p4254_p3 }
  0x10   :  { %4264 = shalt.err (!%p4261_p7)
}
  0x11   :  { %s4316_s27 = smov 128   ;;  %s4317_s28 = smov 8  }
  0x12   :  { %36 = dma.hbm_to_vmem [thread:$0]  %s5478_s3, 15360, %s31_s18, [#allocation5], %s4316_s27, %s4316_s27, %s4317_s28  }
  0x13   :  { %s4318_s12 = smov [#allocation7]   ;;  %s4265_s16 = scalar_lea.hbm %s5480_s5, 18432 }
  0x14   :  { %s44_s13 = sshll.u32 %s4318_s12, 4  ;;  %p4266_p8 = scmp.ne.s32.totalorder %s5480_s5, %s4265_s16  ;;  %s45_s13 = int_to_ptr.vmem [resolvable:$true] %s44_s13 }
  0x15   :  { %p4269_p9 = scmp.lt.u32.totalorder %s4265_s16, %s5480_s5 }
  0x17   :  { %p4271_p10 = pnand %p4269_p9, %p4266_p8 }
  0x19   :  { %4274 = shalt.err (!%p4271_p10)
}
  0x1a   :  { %s4275_s22 = scalar_lea.vmem %s45_s13, 18432  ;;  %p4280_p12 = scmp.lt.s32.totalorder %s45_s13, %s45_s13 }
  0x1b   :  { %p4276_p11 = scmp.ne.s32.totalorder %s45_s13, %s4275_s22  ;;  %p4281_p13 = scmp.lt.s32.totalorder %s4275_s22, %s4275_s22 }
  0x1d   :  { %p4282_p0 = por %p4281_p13, %p4280_p12 }
  0x1f   :  { %p4283_p1 = pnand %p4282_p0, %p4276_p11 }
  0x21   :  { %4286 = shalt.err (!%p4283_p1)
}
  0x22   :  { %50 = dma.hbm_to_vmem [thread:$0]  %s5480_s5, 18432, %s45_s13, [#allocation8], %s4316_s27, %s4316_s27, %s4317_s28  }
  0x23   :  { %4309 = dma.done.wait [#allocation5], 15360  }
  0x24   :  { %4310 = vsyncadd [#allocation5], 4294951936 }
  0x25   :  { %4311 = dma.done.wait [#allocation8], 18432  }
  0x26   :  { %4312 = vsyncadd [#allocation8], 4294948864  ;;  %v89_v0 = vld [vmem:[%s5476_s1] sm:$0xff]  ;;  %v90_v1 = vld [vmem:[%s5476_s1 + $0x8] sm:$0xff]  ;;  %vm102_vm0 = vcmask 441344   ;;  %vm109_vm1 = vcmask 1045504  }
  0x27   :  { %v91_v2 = vld [vmem:[%s5476_s1 + $0x10] sm:$0xff]  ;;  %v3502_v3 = vpack.c.bf16 %v90_v1, %v89_v0  ;;  %v92_v4 = vld [vmem:[%s5476_s1 + $0x18] sm:$0xff]  ;;  %v93_v6 = vld [vmem:[%s5476_s1 + $0x20] sm:$0xff]  ;;  %v5493_v27 = vmov 0.0|0.0   ;;  %v4320_v30 = vmov 0.0   ;;  %vm70_vm2 = vcmask 785408  }
  0x28   :  { %v3506_v5 = vpack.c.bf16 %v92_v4, %v91_v2  ;;  %v94_v7 = vld [vmem:[%s5476_s1 + $0x28] sm:$0xff]  ;;  %v83_v8 = vld [vmem:[%s5475_s0] sm:$0xff]  ;;  %v2666_v9 = vld [vmem:[%s5476_s1 + $0x38] sm:$0xff]  ;;  %68 = vst [vmem:[#allocation2 + $0x8] sm:$0xff] %v4320_v30  ;;  %s4322_s19 = smov 80   ;;  %s4323_s20 = smov 16  }
  0x29   :  { %3503 = vmatprep.subr.bf16.mxu0 %v3502_v3  ;;  %3267 = vmatprep.mubr.msk.f32.mxu0 %vm102_vm0, %v83_v8  ;;  %v2667_v10 = vld [vmem:[%s5476_s1 + $0x40] sm:$0xff]  ;;  %v2668_v11 = vld [vmem:[%s5476_s1 + $0x48] sm:$0xff]  ;;  %v2669_v13 = vld [vmem:[%s5476_s1 + $0x50] sm:$0xff]  ;;  %v3510_v14 = vpack.c.bf16 %v94_v7, %v93_v6  ;;  %69 = vst [vmem:[#allocation2 + $0x10] sm:$0xff] %v4320_v30  ;;  %vm448_vm3 = vcmask 1041792   ;;  %vm450_vm4 = vcmask 386048  }
  0x2a   :  { %3505 = vmatpush3.bf16.msra.mxu0 %v3502_v3  ;;  %v3514_v12 = vpack.c.bf16 %v2667_v10, %v2666_v9  ;;  %v2660_v15 = vld [vmem:[%s5475_s0 + $0x10] sm:$0xff]  ;;  %v3518_v16 = vpack.c.bf16 %v2669_v13, %v2668_v11  ;;  %v2670_v17 = vld [vmem:[%s5476_s1 + $0x58] sm:$0xff]  ;;  %v2671_v18 = vld [vmem:[%s5476_s1 + $0x60] sm:$0xff]  ;;  %67 = vst [vmem:[#allocation2] sm:$0xff] %v4320_v30  ;;  %vm498_vm5 = vcmask 650242   ;;  %vm531_vm6 = vcmask 652292  }
  0x2b   :  { %3507 = vmatprep.subr.bf16.mxu0 %v3506_v5  ;;  %3318 = vmatprep.mubr.msk.f32.mxu1 %vm102_vm0, %v2660_v15  ;;  %v95_v19 = vld [vmem:[%s5476_s1 + $0x30] sm:$0x3f]  ;;  %v3522_v20 = vpack.c.bf16 %v2671_v18, %v2670_v17  ;;  %v84_v21 = vld [vmem:[%s5475_s0 + $0x8] sm:$0xff]  ;;  %v2661_v23 = vld [vmem:[%s5475_s0 + $0x18] sm:$0xff]  ;;  %72 = vst [vmem:[#allocation2 + $0x20] sm:$0xff] %v4320_v30  ;;  %vm512_vm7 = vcmask 390148  }
  0x2c   :  { %3539 = vmatprep.subr.bf16.mxu1 %v3514_v12  ;;  %v2672_v22 = vld [vmem:[%s5476_s1 + $0x68] sm:$0x3f]  ;;  %v603_v25 = vld [vmem:[#allocation4 + $0x108] sm:$0xff]  ;;  %v604_v26 = vld [vmem:[#allocation4 + $0x110] sm:$0xff]  ;;  %73 = vst [vmem:[#allocation2 + $0x28] sm:$0xff] %v4320_v30  ;;  %vm529_vm8 = vcmask 1046148  }
  0x2d   :  { %3541 = vmatpush3.bf16.msra.mxu1 %v3514_v12  ;;  %v602_v24 = vld [vmem:[#allocation4 + $0x100] sm:$0xff]  ;;  %v605_v29 = vld [vmem:[#allocation4 + $0x118] sm:$0xff]  ;;  %74 = vst [vmem:[#allocation2 + $0x30] sm:$0xff] %v4320_v30  ;;  %76 = vst [vmem:[#allocation3] sm:$0xff] %v4320_v30  ;;  %vm5488_vm9 = vcmask 388098   ;;  %vm468_vm10 = vcmask 1042048  }
  0x2e   :  { %3509 = vmatpush3.bf16.msra.mxu0 %v3506_v5  ;;  %3543 = vmatprep.subr.bf16.mxu1 %v3518_v16  ;;  %v4483_v28 = vpack.c.bf16 %v603_v25, %v602_v24  ;;  %77 = vst [vmem:[#allocation3 + $0x8] sm:$0xff] %v4320_v30  ;;  %80 = vst [vmem:[#allocation3 + $0x14] sm:$0xff] %v4320_v30  ;;  %v4496_v31 = vpack.c.bf16 %v605_v29, %v604_v26  ;;  %v606_v32 = vld [vmem:[#allocation4 + $0x120] sm:$0xff]  ;;  %v607_v33 = vld [vmem:[#allocation4 + $0x128] sm:$0xff]  ;;  %vm470_vm11 = vcmask 648192   ;;  %vm5487_vm12 = vcmask 1044098  }
  0x2f   :  { %3511 = vmatprep.subr.bf16.mxu0 %v3510_v14  ;;  %81 = vst [vmem:[#allocation3 + $0x1c] sm:$0xff] %v4320_v30  ;;  %v586_v34 = vld [vmem:[#allocation4 + $0x80] sm:$0xff]  ;;  %v587_v35 = vld [vmem:[#allocation4 + $0x88] sm:$0xff]  ;;  %v4502_v39 = vpack.c.bf16 %v607_v33, %v606_v32  ;;  %v608_v41 = vld [vmem:[#allocation4 + $0x130] sm:$0xff]  ;;  %vm540_vm13 = vcmask 392198   ;;  %vm552_vm14 = vcmask 1048198  }
  0x30   :  { %v4499_v36 = vpack.c.bf16 %v587_v35, %v586_v34  ;;  %v570_v37 = vld [vmem:[#allocation4] sm:$0xff]  ;;  %v571_v38 = vld [vmem:[#allocation4 + $0x8] sm:$0xff]  ;;  %v609_v42 = vld [vmem:[#allocation4 + $0x138] sm:$0xff]  ;;  %71 = vst.msk [vmem:[#allocation2 + $0x18] sm:$0xff] %vm70_vm2, %v4320_v30  ;;  %vm554_vm15 = vcmask 654342   ;;  %s4325_s3 = smov 32  }
  0x31   :  { %3545 = vmatpush3.bf16.msra.mxu1 %v3518_v16  ;;  %v4504_v40 = vpack.c.bf16 %v571_v38, %v570_v37  ;;  %v4510_v43 = vpack.c.bf16 %v609_v42, %v608_v41  ;;  %v610_v44 = vld [vmem:[#allocation4 + $0x140] sm:$0xff]  ;;  %v611_v45 = vld [vmem:[#allocation4 + $0x148] sm:$0xff]  ;;  %v612_v47 = vld [vmem:[#allocation4 + $0x150] sm:$0xff]  ;;  %75 = vst.msk [vmem:[#allocation2 + $0x38] sm:$0xff] %vm70_vm2, %v4320_v30 }
  0x32   :  { %3513 = vmatpush3.bf16.msra.mxu0 %v3510_v14  ;;  %3547 = vmatprep.subr.bf16.mxu1 %v3522_v20  ;;  %v4514_v46 = vpack.c.bf16 %v611_v45, %v610_v44  ;;  %v613_v48 = vld [vmem:[#allocation4 + $0x158] sm:$0xff]  ;;  %v614_v50 = vld [vmem:[#allocation4 + $0x160] sm:$0xff]  ;;  %v615_v51 = vld [vmem:[#allocation4 + $0x168] sm:$0xff] }
  0x33   :  { %3265 = vmatprep.subr.msk.mxu0 %vm109_vm1, %v95_v19  ;;  %v4518_v49 = vpack.c.bf16 %v613_v48, %v612_v47  ;;  %v4522_v52 = vpack.c.bf16 %v615_v51, %v614_v50  ;;  %v616_v53 = vld [vmem:[#allocation4 + $0x170] sm:$0xff]  ;;  %v617_v54 = vld [vmem:[#allocation4 + $0x178] sm:$0xff]  ;;  %v618_v56 = vld [vmem:[#allocation4 + $0x180] sm:$0xff] }
  0x34   :  { %v4526_v55 = vpack.c.bf16 %v617_v54, %v616_v53  ;;  %v619_v57 = vld [vmem:[#allocation4 + $0x188] sm:$0xff]  ;;  %v2662_v63 = vld [vmem:[%s5477_s2] ss:$0 sm:$0xff]  ;;  %v620_v17 = vld [vmem:[#allocation4 + $0x190] sm:$0xff]  ;;  %s4321_s2 = smov 48  }
  0x35   :  { %3549 = vmatpush3.bf16.msra.mxu1 %v3522_v20  ;;  %v4530_v58 = vpack.c.bf16 %v619_v57, %v618_v56  ;;  %v589_v13 = vld [vmem:[#allocation4 + $0x98] sm:$0xff]  ;;  %v574_v29 = vld [vmem:[#allocation4 + $0x20] sm:$0xff]  ;;  %v575_v30 = vld [vmem:[#allocation4 + $0x28] sm:$0xff] }
  0x36   :  { %3266 = vmatpush3.msk.msra.mxu0 %vm109_vm1, %v95_v19  ;;  %3316 = vmatprep.subr.msk.mxu1 %vm109_vm1, %v2672_v22  ;;  %v622_v32 = vld [vmem:[#allocation4 + $0x1a0] sm:$0xff]  ;;  %v4554_v35 = vpack.c.bf16 %v575_v30, %v574_v29  ;;  %v623_v37 = vld [vmem:[#allocation4 + $0x1a8] sm:$0xff]  ;;  %v592_v45 = vld [vmem:[#allocation4 + $0xb0] sm:$0xff] }
  0x37   :  { %3268 = vmatmul.mubr.msk.f32.vlgmr.msra.gmra.mrb[0].mxu0 %vm102_vm0, %v84_v21  ;;  %3515 = vmatprep.subr.bf16.mxu0 %v3514_v12  ;;  %v4557_v41 = vpack.c.bf16 %v623_v37, %v622_v32  ;;  %v593_v47 = vld [vmem:[#allocation4 + $0xb8] sm:$0xff]  ;;  %v576_v53 = vld [vmem:[#allocation4 + $0x30] sm:$0xff]  ;;  %v599_v29 = vld [vmem:[#allocation4 + $0xe8] sm:$0xff] }
  0x38   :  { %3517 = vmatpush3.bf16.msra.mxu0 %v3514_v12  ;;  %3284 = vmatprep.mubr.msk.f32.mxu0 %vm102_vm0, %v83_v8  ;;  %v588_v12 = vld [vmem:[#allocation4 + $0x90] sm:$0xff]  ;;  %v4561_v51 = vpack.c.bf16 %v593_v47, %v592_v45  ;;  %v577_v54 = vld [vmem:[#allocation4 + $0x38] sm:$0xff]  ;;  %v582_v32 = vld [vmem:[#allocation4 + $0x60] sm:$0xff] }
  0x39   :  { %3519 = vmatprep.subr.bf16.mxu0 %v3518_v16  ;;  %3317 = vmatpush3.msk.msra.mxu1 %vm109_vm1, %v2672_v22  ;;  %v624_v56 = vld [vmem:[#allocation4 + $0x1b0] sm:$0xff]  ;;  %v585_v47 = vld [vmem:[#allocation4 + $0x78] sm:$0xff] }
  0x3a   :  { %3319 = vmatmul.mubr.msk.f32.vlgmr.msra.gmra.mrb[0].mxu1 %vm102_vm0, %v2661_v23  ;;  %3582 = vmatprep.subr.bf16.mxu1 %v5493_v27  ;;  %v584_v45 = vld [vmem:[#allocation4 + $0x70] sm:$0xff] }
  0x3b   :  { %3584 = vmatpush1.bf16.msra.mxu1 %v4483_v28 }
  0x3c   :  { %3521 = vmatpush3.bf16.msra.mxu0 %v3518_v16  ;;  %3585 = vmatprep.subr.bf16.mxu1 %v5493_v27  ;;  %v573_v16 = vld [vmem:[#allocation4 + $0x18] sm:$0xff] }
  0x3d   :  { %3523 = vmatprep.subr.bf16.mxu0 %v3522_v20 }
  0x3f   :  { %3587 = vmatpush1.bf16.msra.mxu1 %v4496_v31 }
  0x40   :  { %3525 = vmatpush3.bf16.msra.mxu0 %v3522_v20  ;;  %3588 = vmatprep.subr.bf16.mxu1 %v5493_v27 }
  0x41   :  { %3282 = vmatprep.subr.msk.mxu0 %vm109_vm1, %v2672_v22 }
  0x43   :  { %3590 = vmatpush1.bf16.msra.mxu1 %v4502_v39 }
  0x44   :  { %3283 = vmatpush3.msk.msra.mxu0 %vm109_vm1, %v2672_v22  ;;  %3591 = vmatprep.subr.bf16.mxu1 %v5493_v27  ;;  %v590_v22 = vld [vmem:[#allocation4 + $0xa0] sm:$0xff] }
  0x45   :  { %3285 = vmatmul.mubr.msk.f32.vlgmr.msra.gmra.mrb[2].mxu0 %vm102_vm0, %v84_v21  ;;  %3527 = vmatprep.subr.bf16.mxu0 %v3502_v3 }
  0x46   :  { %3529 = vmatpush3.bf16.msra.mxu0 %v3502_v3  ;;  %3301 = vmatprep.mubr.msk.f32.mxu0 %vm102_vm0, %v2660_v15  ;;  %v572_v15 = vld [vmem:[#allocation4 + $0x10] sm:$0xff] }
  0x47   :  { %3531 = vmatprep.subr.bf16.mxu0 %v3506_v5  ;;  %3593 = vmatpush1.bf16.msra.mxu1 %v4510_v43  ;;  %v4544_v18 = vpack.c.bf16 %v573_v16, %v572_v15  ;;  %v580_v16 = vld [vmem:[#allocation4 + $0x50] sm:$0xff] }
  0x48   :  { %3594 = vmatprep.subr.bf16.mxu1 %v5493_v27 }
  0x4a   :  { %3533 = vmatpush3.bf16.msra.mxu0 %v3506_v5 }
  0x4b   :  { %3535 = vmatprep.subr.bf16.mxu0 %v3510_v14  ;;  %3596 = vmatpush1.bf16.msra.mxu1 %v4514_v46 }
  0x4c   :  { %3597 = vmatprep.subr.bf16.mxu1 %v5493_v27 }
  0x4e   :  { %3537 = vmatpush3.bf16.msra.mxu0 %v3510_v14  ;;  %v4538_v14 = vpack.c.bf16 %v589_v13, %v588_v12  ;;  %v597_v12 = vld [vmem:[#allocation4 + $0xd8] sm:$0xff] }
  0x4f   :  { %3299 = vmatprep.subr.msk.mxu0 %vm109_vm1, %v95_v19  ;;  %3599 = vmatpush1.bf16.msra.mxu1 %v4518_v49 }
  0x50   :  { %3600 = vmatprep.subr.bf16.mxu1 %v5493_v27 }
  0x52   :  { %3300 = vmatpush3.msk.msra.mxu0 %vm109_vm1, %v95_v19  ;;  %v621_v19 = vld [vmem:[#allocation4 + $0x198] sm:$0xff]  ;;  %vm458_vm1 = vcmask 123904  }
  0x53   :  { %3302 = vmatmul.mubr.msk.f32.vlgmr.msra.gmra.mrb[4].mxu0 %vm102_vm0, %v2661_v23  ;;  %3551 = vmatprep.subr.bf16.mxu0 %v4499_v36  ;;  %v4547_v20 = vpack.c.bf16 %v621_v19, %v620_v17  ;;  %v591_v23 = vld [vmem:[#allocation4 + $0xa8] sm:$0xff]  ;;  %v581_v17 = vld [vmem:[#allocation4 + $0x58] sm:$0xff]  ;;  %v628_v19 = vld [vmem:[#allocation4 + $0x1d0] sm:$0xff]  ;;  %vm456_vm0 = vcmask 1041536  }
  0x54   :  { %3553 = vmatpush3.bf16.msra.mxu0 %v4504_v40  ;;  %3602 = vmatpush1.bf16.msra.mxu1 %v4522_v52  ;;  %v4551_v26 = vpack.c.bf16 %v591_v23, %v590_v22  ;;  %v4594_v22 = vpack.c.bf16 %v581_v17, %v580_v16  ;;  %v629_v23 = vld [vmem:[#allocation4 + $0x1d8] sm:$0xff] }
  0x55   :  { %3603 = vmatprep.subr.bf16.mxu1 %v5493_v27  ;;  %3555 = vmatprep.subr.bf16.mxu0 %v4538_v14 }
  0x58   :  { %3605 = vmatpush1.bf16.msra.mxu1 %v4526_v55  ;;  %3557 = vmatpush3.bf16.msra.mxu0 %v4544_v18 }
  0x59   :  { %3606 = vmatprep.subr.bf16.mxu1 %v5493_v27  ;;  %3559 = vmatprep.subr.bf16.mxu0 %v4551_v26 }
  0x5c   :  { %3608 = vmatpush1.bf16.msra.mxu1 %v4530_v58  ;;  %3561 = vmatpush3.bf16.msra.mxu0 %v4554_v35 }
  0x5d   :  { %3609 = vmatprep.subr.bf16.mxu1 %v5493_v27  ;;  %3563 = vmatprep.subr.bf16.mxu0 %v4561_v51 }
  0x60   :  { %3611 = vmatpush1.bf16.msra.mxu1 %v4547_v20 }
  0x61   :  { %3612 = vmatprep.subr.bf16.mxu1 %v5493_v27 }
  0x64   :  { %3614 = vmatpush1.bf16.msra.mxu1 %v4557_v41 }
  0x65   :  { %3615 = vmatprep.subr.bf16.mxu1 %v5493_v27 }
 0x10a   :  { %v3269_v59 = vpop.f32.mrb[0].mxu0 }
 0x10b   :  { %v179_v60 = vpop.f32.mrb[1].mxu0  ;;  %v185_v0 = vadd.f32 %v3269_v59, %v2662_v63  ;;  %v4564_v59 = vpack.c.bf16 %v577_v54, %v576_v53  ;;  %v798_v53 = vld [vmem:[#allocation4 + $0x268] sm:$0xff] }
 0x10c   :  { %v180_v1 = vadd.f32 %v2662_v63, %v179_v60  ;;  %v625_v60 = vld [vmem:[#allocation4 + $0x1b8] sm:$0xff] }
 0x10d   :  { %v3320_v61 = vpop.f32.mrb[0].mxu1  ;;  %v189_v6 = vmax.f32 %v185_v0, 0.0  ;;  %3565 = vmatpush3.bf16.msra.mxu0 %v4564_v59  ;;  %v594_v0 = vld [vmem:[#allocation4 + $0xc0] sm:$0xff] }
 0x10e   :  { %v431_v62 = vpop.f32.mrb[1].mxu1  ;;  %v188_v8 = vmax.f32 %v180_v1, 0.0  ;;  %v437_v21 = vadd.f32 %v3320_v61, %v2662_v63  ;;  %v595_v1 = vld [vmem:[#allocation4 + $0xc8] sm:$0xff] }
 0x10f   :  { %v432_v25 = vadd.f32 %v2662_v63, %v431_v62  ;;  %v4567_v62 = vpack.c.bf16 %v625_v60, %v624_v56 }
 0x110   :  { %v441_v44 = vmax.f32 %v437_v21, 0.0 }
 0x111   :  { %v440_v50 = vmax.f32 %v432_v25, 0.0  ;;  %5502 = vst [vmem:[#allocation13_spill] sm:$0xff] %v4567_v62  ;;  %3617 = vmatpush1.bf16.msra.mxu1 %v4567_v62  ;;  %v598_v25 = vld [vmem:[#allocation4 + $0xe0] sm:$0xff]  ;;  %v832_v62 = vld [vmem:[#allocation4 + $0x378] sm:$0xff] }
 0x112   :  { %3618 = vmatprep.subr.bf16.mxu1 %v5493_v27  ;;  %v4603_v30 = vpack.c.bf16 %v599_v29, %v598_v25  ;;  %v781_v25 = vld [vmem:[#allocation4 + $0x1e0] sm:$0xff] }
 0x118   :  { %v3286_v2 = vpop.f32.mrb[2].mxu0 }
 0x119   :  { %v273_v3 = vadd.f32 %v3286_v2, %v2662_v63  ;;  %v267_v4 = vpop.f32.mrb[3].mxu0 }
 0x11a   :  { %v268_v5 = vadd.f32 %v2662_v63, %v267_v4  ;;  %v578_v4 = vld [vmem:[#allocation4 + $0x40] sm:$0xff] }
 0x11b   :  { %v277_v7 = vmax.f32 %v273_v3, 0.0  ;;  %v4575_v3 = vpack.c.bf16 %v595_v1, %v594_v0 }
 0x11c   :  { %v276_v9 = vmax.f32 %v268_v5, 0.0  ;;  %v579_v5 = vld [vmem:[#allocation4 + $0x48] sm:$0xff] }
 0x11d   :  { %v279_v10 = vmax.f32 %v189_v6, %v277_v7  ;;  %v626_v6 = vld [vmem:[#allocation4 + $0x1c0] sm:$0xff]  ;;  %3567 = vmatprep.subr.bf16.mxu0 %v4575_v3 }
 0x11e   :  { %v278_v11 = vmax.f32 %v188_v8, %v276_v9  ;;  %v627_v8 = vld [vmem:[#allocation4 + $0x1c8] sm:$0xff]  ;;  %v4582_v9 = vpack.c.bf16 %v579_v5, %v578_v4 }
 0x120   :  { %3569 = vmatpush3.bf16.msra.mxu0 %v4582_v9 }
 0x126   :  { %v3303_v24 = vpop.f32.mrb[4].mxu0 }
 0x127   :  { %v358_v33 = vadd.f32 %v3303_v24, %v2662_v63  ;;  %v352_v34 = vpop.f32.mrb[5].mxu0  ;;  %v4598_v24 = vpack.c.bf16 %v629_v23, %v628_v19  ;;  %v816_v19 = vld [vmem:[#allocation4 + $0x2f8] sm:$0xff] }
 0x128   :  { %v353_v38 = vadd.f32 %v2662_v63, %v352_v34 }
 0x129   :  { %v362_v42 = vmax.f32 %v358_v33, 0.0  ;;  %5504 = vst [vmem:[#allocation15_spill] sm:$0xff] %v4598_v24  ;;  %v583_v33 = vld [vmem:[#allocation4 + $0x68] sm:$0xff] }
 0x12a   :  { %v361_v48 = vmax.f32 %v353_v38, 0.0  ;;  %v4607_v37 = vpack.c.bf16 %v583_v33, %v582_v32  ;;  %v600_v38 = vld [vmem:[#allocation4 + $0xf0] sm:$0xff]  ;;  %v782_v32 = vld [vmem:[#allocation4 + $0x1e8] sm:$0xff]  ;;  %v817_v33 = vld [vmem:[#allocation4 + $0x300] sm:$0xff] }
 0x12b   :  { %v364_v57 = vmax.f32 %v279_v10, %v362_v42  ;;  %v4584_v10 = vpack.c.bf16 %v627_v8, %v626_v6  ;;  %v601_v42 = vld [vmem:[#allocation4 + $0xf8] sm:$0xff]  ;;  %v813_v6 = vld [vmem:[#allocation4 + $0x2e0] sm:$0xff] }
 0x12c   :  { %v363_v61 = vmax.f32 %v278_v11, %v361_v48  ;;  %v596_v11 = vld [vmem:[#allocation4 + $0xd0] sm:$0xff]  ;;  %v4616_v48 = vpack.c.bf16 %v585_v47, %v584_v45  ;;  %v4679_v45 = vpack.c.bf16 %v782_v32, %v781_v25  ;;  %v788_v32 = vld [vmem:[#allocation4 + $0x218] sm:$0xff] }
 0x12d   :  { %v4569_v63 = vmax.f32 %v364_v57, %v441_v44  ;;  %5503 = vst [vmem:[#allocation14_spill] sm:$0xff] %v4584_v10  ;;  %3620 = vmatpush1.bf16.msra.mxu1 %v4584_v10  ;;  %v4590_v15 = vpack.c.bf16 %v597_v12, %v596_v11  ;;  %v4613_v44 = vpack.c.bf16 %v601_v42, %v600_v38  ;;  %v815_v12 = vld [vmem:[#allocation4 + $0x2f0] sm:$0xff]  ;;  %v800_v42 = vld [vmem:[#allocation4 + $0x278] sm:$0xff] }
 0x12e   :  { %v4572_v2 = vmax.f32 %v363_v61, %v440_v50  ;;  %3621 = vmatprep.subr.bf16.mxu1 %v5493_v27  ;;  %v797_v50 = vld [vmem:[#allocation4 + $0x260] sm:$0xff]  ;;  %v4669_v23 = vpack.c.bf16 %v816_v19, %v815_v12  ;;  %v799_v38 = vld [vmem:[#allocation4 + $0x270] sm:$0xff]  ;;  %v822_v12 = vld [vmem:[#allocation4 + $0x328] sm:$0xff] }
 0x12f   :  { %v519_v7 = vrot.slane %v4569_v63, 6  ;;  %v506_v13 = vrot.slane %v4569_v63, 4  ;;  %3571 = vmatprep.subr.bf16.mxu0 %v4590_v15  ;;  %v4622_v54 = vpack.c.bf16 %v798_v53, %v797_v50  ;;  %v783_v50 = vld [vmem:[#allocation4 + $0x1f0] sm:$0xff]  ;;  %v784_v53 = vld [vmem:[#allocation4 + $0x1f8] sm:$0xff] }
 0x130   :  { %445 = vrot.lane.b32.xlu0 %v4572_v2, %s4321_s2  ;;  %v464_v21 = vrot.slane %v4572_v2, 2  ;;  %3573 = vmatpush3.bf16.msra.mxu0 %v4594_v22  ;;  %v486_v34 = vrot.slane %v4572_v2, 4  ;;  %v787_v25 = vld [vmem:[#allocation4 + $0x210] sm:$0xff]  ;;  %v812_v10 = vld [vmem:[#allocation4 + $0x2d8] sm:$0xff] }
 0x131   :  { %520 = vrot.lane.b32.xlu1 %v519_v7, %s4322_s19  ;;  %3623 = vmatpush1.bf16.msra.mxu1 %v4598_v24  ;;  %v811_v24 = vld [vmem:[#allocation4 + $0x2d0] sm:$0xff] }
 0x132   :  { %3656 = vmatprep.subr.bf16.mxu1 %v5493_v27  ;;  %3575 = vmatprep.subr.bf16.mxu0 %v4603_v30 }
 0x134   :  { %507 = vrot.lane.b32.xlu0 %v506_v13, %s4321_s2  ;;  %3577 = vmatpush3.bf16.msra.mxu0 %v4607_v37 }
 0x135   :  { %472 = vrot.lane.b32.xlu1 %v464_v21, %s4321_s2  ;;  %3579 = vmatprep.subr.bf16.mxu0 %v4613_v44 }
 0x138   :  { %465 = vrot.lane.b32.xlu0 %v464_v21, %s4322_s19  ;;  %3581 = vmatpush3.bf16.msra.mxu0 %v4616_v48 }
 0x139   :  { %487 = vrot.lane.b32.xlu1 %v486_v34, %s4322_s19  ;;  %3625 = vmatprep.subr.bf16.mxu0 %v4622_v54 }
 0x13c   :  { %533 = vrot.lane.b32.xlu0 %v519_v7, %s4321_s2 }
 0x13d   :  { %547 = vrot.lane.b32.xlu1 %v4569_v63, %s4322_s19 }
 0x140   :  { %452 = vrot.lane.b32.xlu0 %v4572_v2, %s4323_s20 }
 0x141   :  { %481 = vrot.lane.b32.xlu1 %v464_v21, %s4323_s20 }
 0x144   :  { %514 = vrot.lane.b32.xlu0 %v506_v13, %s4323_s20 }
 0x145   :  { %542 = vrot.lane.b32.xlu1 %v519_v7, %s4323_s20  ;;  %v814_v7 = vld [vmem:[#allocation4 + $0x2e8] sm:$0xff] }
 0x146   :  { %v4653_v11 = vpack.c.bf16 %v814_v7, %v813_v6  ;;  %v786_v7 = vld [vmem:[#allocation4 + $0x208] sm:$0xff] }
 0x148   :  { %500 = vrot.lane.b32.xlu0 %v486_v34, %s4321_s2  ;;  %v818_v34 = vld [vmem:[#allocation4 + $0x308] sm:$0xff] }
 0x149   :  { %556 = vrot.lane.b32.xlu1 %v4569_v63, %s4321_s2  ;;  %v4681_v47 = vpack.c.bf16 %v818_v34, %v817_v33  ;;  %v823_v33 = vld [vmem:[#allocation4 + $0x330] sm:$0xff]  ;;  %v824_v34 = vld [vmem:[#allocation4 + $0x338] sm:$0xff] }
 0x1a2   :  { %v446_v56 = vpop.permute.xlu0 %445 }
 0x1a3   :  { %449 = vst.msk [vmem:[#allocation2 + $0x8] sm:$0x3] %vm448_vm3, %v446_v56  ;;  %v4631_v57 = vpop.permute.xlu1 %520 }
 0x1a4   :  { %451 = vst.msk [vmem:[#allocation2 + $0x10] sm:$0x3] %vm450_vm4, %v446_v56 }
 0x1a5   :  { %524 = vst.msk [vmem:[#allocation2 + $0x38] sm:$0xc] %vm498_vm5, %v4631_v57 }
 0x1a6   :  { %532 = vst.msk [vmem:[#allocation2 + $0x18] sm:$0x30] %vm531_vm6, %v4631_v57  ;;  %v508_v60 = vpop.permute.xlu0 %507 }
 0x1a7   :  { %513 = vst.msk [vmem:[#allocation2 + $0x10] sm:$0x30] %vm512_vm7, %v508_v60  ;;  %v473_v61 = vpop.permute.xlu1 %472 }
 0x1a8   :  { %530 = vst.msk [vmem:[#allocation2 + $0x10] sm:$0x30] %vm529_vm8, %v4631_v57 }
 0x1a9   :  { %476 = vst.msk [vmem:[#allocation2 + $0x30] sm:$0x3] %vm450_vm4, %v473_v61  ;;  %vm460_vm4 = vcmask 1043586  }
 0x1aa   :  { %480 = vst.msk [vmem:[#allocation2 + $0x10] sm:$0xc] %vm5488_vm9, %v473_v61  ;;  %v466_v63 = vpop.permute.xlu0 %465  ;;  %vm510_vm9 = vcmask 1045892  }
 0x1ab   :  { %469 = vst.msk [vmem:[#allocation2 + $0x10] sm:$0x3] %vm468_vm10, %v466_v63  ;;  %v488_v0 = vpop.permute.xlu1 %487 }
 0x1ac   :  { %471 = vst.msk [vmem:[#allocation2 + $0x18] sm:$0x3] %vm470_vm11, %v466_v63  ;;  %491 = vst.msk [vmem:[#allocation2 + $0x38] sm:$0x3] %vm470_vm11, %v488_v0  ;;  %vm494_vm11 = vcmask 128004  }
 0x1ad   :  { %490 = vst.msk [vmem:[#allocation2 + $0x30] sm:$0x3] %vm468_vm10, %v488_v0  ;;  %vm462_vm10 = vcmask 125954  }
 0x1ae   :  { %497 = vst.msk [vmem:[#allocation2 + $0x10] sm:$0xc] %vm5487_vm12, %v488_v0  ;;  %v534_v1 = vpop.permute.xlu0 %533  ;;  %vm477_vm12 = vcmask 1043842  }
 0x1af   :  { %499 = vst.msk [vmem:[#allocation2 + $0x18] sm:$0xc] %vm498_vm5, %v488_v0  ;;  %v548_v2 = vpop.permute.xlu1 %547  ;;  %vm492_vm5 = vcmask 1045636   ;;  %v801_v0 = vld [vmem:[#allocation4 + $0x280] sm:$0xff] }
 0x1b0   :  { %537 = vst.msk [vmem:[#allocation2 + $0x30] sm:$0x30] %vm512_vm7, %v534_v1  ;;  %vm527_vm7 = vcmask 130054  }
 0x1b1   :  { %541 = vst.msk [vmem:[#allocation2 + $0x10] sm:$0xc0] %vm540_vm13, %v534_v1 }
 0x1b2   :  { %550 = vst.msk [vmem:[#allocation2 + $0x30] sm:$0x30] %vm529_vm8, %v548_v2  ;;  %v453_v4 = vpop.permute.xlu0 %452  ;;  %vm538_vm8 = vcmask 1047942  }
 0x1b3   :  { %551 = vst.msk [vmem:[#allocation2 + $0x38] sm:$0x30] %vm531_vm6, %v548_v2  ;;  %v482_v5 = vpop.permute.xlu1 %481  ;;  %vm525_vm6 = vcmask 1047686  }
 0x1b4   :  { %553 = vst.msk [vmem:[#allocation2 + $0x10] sm:$0xc0] %vm552_vm14, %v548_v2  ;;  %vm1276_vm14 = vcmask 1042176  }
 0x1b5   :  { %555 = vst.msk [vmem:[#allocation2 + $0x18] sm:$0xc0] %vm554_vm15, %v548_v2  ;;  %v4691_v2 = vpack.c.bf16 %v784_v53, %v783_v50  ;;  %v4711_v50 = vpack.c.bf16 %v788_v32, %v787_v25  ;;  %v4713_v53 = vpack.c.bf16 %v824_v34, %v823_v33  ;;  %v792_v25 = vld [vmem:[#allocation4 + $0x238] sm:$0xff]  ;;  %v827_v32 = vld [vmem:[#allocation4 + $0x350] sm:$0xff]  ;;  %v809_v34 = vld [vmem:[#allocation4 + $0x2c0] sm:$0xff]  ;;  %vm1277_vm15 = vcmask 783364  }
 0x1b6   :  { %457 = vst.msk [vmem:[#allocation2 + $0x20] sm:$0x3] %vm456_vm0, %v453_v4  ;;  %v515_v8 = vpop.permute.xlu0 %514  ;;  %v828_v33 = vld [vmem:[#allocation4 + $0x358] sm:$0xff]  ;;  %vm1287_vm0 = vcmask 1041664  }
 0x1b7   :  { %459 = vst.msk [vmem:[#allocation2 + $0x28] sm:$0x3] %vm458_vm1, %v453_v4  ;;  %v543_v13 = vpop.permute.xlu1 %542  ;;  %vm1288_vm1 = vcmask 259076  }
 0x1b8   :  { %461 = vst.msk [vmem:[#allocation2] sm:$0xc] %vm460_vm4, %v453_v4  ;;  %484 = vst.msk [vmem:[#allocation2 + $0x20] sm:$0xc] %vm460_vm4, %v482_v5  ;;  %vm1291_vm4 = vcmask 1043714  }
 0x1b9   :  { %463 = vst.msk [vmem:[#allocation2 + $0x8] sm:$0xc] %vm462_vm10, %v453_v4  ;;  %485 = vst.msk [vmem:[#allocation2 + $0x28] sm:$0xc] %vm462_vm10, %v482_v5  ;;  %vm1292_vm10 = vcmask 261126  }
 0x1ba   :  { %475 = vst.msk [vmem:[#allocation2 + $0x28] sm:$0x3] %vm448_vm3, %v473_v61  ;;  %v501_v21 = vpop.permute.xlu0 %500  ;;  %vm5505_vm3 = vcmask 388098  }
 0x1bb   :  { %493 = vst.msk [vmem:[#allocation2] sm:$0x30] %vm492_vm5, %v482_v5  ;;  %517 = vst.msk [vmem:[#allocation2 + $0x20] sm:$0x30] %vm492_vm5, %v515_v8  ;;  %v4659_v17 = vld [vmem:[#allocation2 + $0x10] sm:$0xff]  ;;  %v557_v29 = vpop.permute.xlu1 %556 }
 0x1bc   :  { %495 = vst.msk [vmem:[#allocation2 + $0x8] sm:$0x30] %vm494_vm11, %v482_v5  ;;  %518 = vst.msk [vmem:[#allocation2 + $0x28] sm:$0x30] %vm494_vm11, %v515_v8  ;;  %v564_v16 = vld [vmem:[#allocation2 + $0x18] sm:$0xff]  ;;  %v785_v5 = vld [vmem:[#allocation4 + $0x200] sm:$0xff] }
 0x1bd   :  { %478 = vst.msk [vmem:[#allocation2 + $0x8] sm:$0xc] %vm477_vm12, %v473_v61  ;;  %2683 = vmatprep.mubr.msk.f32.mxu1 %vm70_vm2, %v564_v16  ;;  %503 = vst.msk [vmem:[#allocation2 + $0x28] sm:$0xc] %vm477_vm12, %v501_v21  ;;  %v820_v61 = vld [vmem:[#allocation4 + $0x318] sm:$0xff]  ;;  %v4701_v19 = vpack.c.bf16 %v786_v7, %v785_v5  ;;  %v807_v5 = vld [vmem:[#allocation4 + $0x2b0] sm:$0xff] }
 0x1be   :  { %511 = vst.msk [vmem:[#allocation2 + $0x8] sm:$0x30] %vm510_vm9, %v508_v60  ;;  %536 = vst.msk [vmem:[#allocation2 + $0x28] sm:$0x30] %vm510_vm9, %v534_v1  ;;  %774 = vmatmul.mubr.f32.vlgmr.msra.gmra.mrb[2].mxu1 %v4659_v17  ;;  %vm5506_vm9 = vcmask 1044098   ;;  %v4684_v60 = vpack.c.bf16 %v800_v42, %v799_v38  ;;  %v805_v38 = vld [vmem:[#allocation4 + $0x2a0] sm:$0xff] }
 0x1bf   :  { %526 = vst.msk [vmem:[#allocation2] sm:$0xc0] %vm525_vm6, %v515_v8  ;;  %545 = vst.msk [vmem:[#allocation2 + $0x20] sm:$0xc0] %vm525_vm6, %v543_v13  ;;  %3658 = vmatpush1.bf16.msra.mxu1 %v4653_v11  ;;  %2684 = vmatprep.mubr.msk.f32.mxu1 %vm70_vm2, %v564_v16  ;;  %v804_v16 = vld [vmem:[#allocation4 + $0x298] sm:$0xff]  ;;  %v806_v42 = vld [vmem:[#allocation4 + $0x2a8] sm:$0xff] }
 0x1c0   :  { %528 = vst.msk [vmem:[#allocation2 + $0x8] sm:$0xc0] %vm527_vm7, %v515_v8  ;;  %546 = vst.msk [vmem:[#allocation2 + $0x28] sm:$0xc0] %vm527_vm7, %v543_v13  ;;  %3659 = vmatprep.subr.bf16.mxu1 %v5493_v27  ;;  %v821_v8 = vld [vmem:[#allocation4 + $0x320] sm:$0xff]  ;;  %v803_v13 = vld [vmem:[#allocation4 + $0x290] sm:$0xff] }
 0x1c1   :  { %539 = vst.msk [vmem:[#allocation2 + $0x8] sm:$0xc0] %vm538_vm8, %v534_v1  ;;  %559 = vst.msk [vmem:[#allocation2 + $0x28] sm:$0xc0] %vm538_vm8, %v557_v29  ;;  %v802_v1 = vld [vmem:[#allocation4 + $0x288] sm:$0xff]  ;;  %v808_v7 = vld [vmem:[#allocation4 + $0x2b8] sm:$0xff] }
 0x1c2   :  { %504 = vst.msk [vmem:[#allocation2 + $0x30] sm:$0xc] %vm5505_vm3, %v501_v21  ;;  %v4696_v6 = vpack.c.bf16 %v802_v1, %v801_v0  ;;  %v4703_v21 = vpack.c.bf16 %v822_v12, %v821_v8  ;;  %v825_v0 = vld [vmem:[#allocation4 + $0x340] sm:$0xff]  ;;  %v826_v1 = vld [vmem:[#allocation4 + $0x348] sm:$0xff]  ;;  %vm78_vm12 = vcmask 519168   ;;  %vm4952_vm5 = vmor %vm1277_vm15, %vm1276_vm14  ;;  %vm1283_vm11 = vcmask 261120  }
 0x1c3   :  { %523 = vst.msk [vmem:[#allocation2 + $0x30] sm:$0xc] %vm5506_vm9, %v4631_v57  ;;  %3661 = vmatpush1.bf16.msra.mxu1 %v4669_v23  ;;  %v819_v57 = vld [vmem:[#allocation4 + $0x310] sm:$0xff]  ;;  %v4723_v12 = vpack.c.bf16 %v826_v1, %v825_v0  ;;  %v794_v1 = vld [vmem:[#allocation4 + $0x248] sm:$0xff]  ;;  %vm4956_vm6 = vmor %vm1288_vm1, %vm1287_vm0  ;;  %vm1316_vm8 = vcmask 1044226   ;;  %vm1317_vm3 = vcmask 785414  }
 0x1c4   :  { %560 = vst.msk [vmem:[#allocation2 + $0x30] sm:$0xc0] %vm540_vm13, %v557_v29  ;;  %3662 = vmatprep.subr.bf16.mxu1 %v5493_v27  ;;  %v4693_v4 = vpack.c.bf16 %v820_v61, %v819_v57  ;;  %v4707_v29 = vpack.c.bf16 %v804_v16, %v803_v13  ;;  %v4717_v57 = vpack.c.bf16 %v806_v42, %v805_v38  ;;  %v790_v61 = vld [vmem:[#allocation4 + $0x228] sm:$0xff]  ;;  %v791_v13 = vld [vmem:[#allocation4 + $0x230] sm:$0xff]  ;;  %vm4326_vm13 = vmmov 0   ;;  %vm4960_vm7 = vmor %vm1292_vm10, %vm1291_vm4 }
 0x1c5   :  { %5507 = vst [vmem:[#allocation16_spill] sm:$0xff] %v4723_v12  ;;  %v4727_v16 = vpack.c.bf16 %v808_v7, %v807_v5  ;;  %v810_v38 = vld [vmem:[#allocation4 + $0x2c8] sm:$0xff]  ;;  %v4731_v42 = vpack.c.bf16 %v792_v25, %v791_v13  ;;  %v829_v5 = vld [vmem:[#allocation4 + $0x360] sm:$0xff]  ;;  %vm4972_vm9 = vmor %vm1317_vm3, %vm1316_vm8 }
 0x1c6   :  { %v4686_v63 = vld [vmem:[#allocation2] sm:$0xff]  ;;  %v4737_v0 = vpack.c.bf16 %v810_v38, %v809_v34  ;;  %v830_v7 = vld [vmem:[#allocation4 + $0x368] sm:$0xff]  ;;  %v831_v38 = vld [vmem:[#allocation4 + $0x370] sm:$0xff] }
 0x1c7   :  { %3664 = vmatpush1.bf16.msra.mxu1 %v4681_v47  ;;  %v4743_v25 = vpack.c.bf16 %v830_v7, %v829_v5  ;;  %v796_v34 = vld [vmem:[#allocation4 + $0x258] sm:$0xff]  ;;  %v834_v5 = vld [vmem:[#allocation4 + $0x388] sm:$0xff] }
 0x1c8   :  { %v562_v56 = vld [vmem:[#allocation2 + $0x8] sm:$0xff]  ;;  %3665 = vmatprep.subr.bf16.mxu1 %v5493_v27  ;;  %v836_v7 = vld [vmem:[#allocation4 + $0x398] sm:$0xff] }
 0x1c9   :  { %703 = vmatprep.mubr.f32.mxu0 %v562_v56 }
 0x1ca   :  { %704 = vmatmul.mubr.f32.vlgmr.msra.gmra.mrb[6].mxu0 %v4686_v63 }
 0x1cb   :  { %3627 = vmatpush3.bf16.msra.mxu0 %v4679_v45  ;;  %905 = vmatprep.mubr.f32.mxu0 %v562_v56  ;;  %v789_v56 = vld [vmem:[#allocation4 + $0x220] sm:$0xff] }
 0x1cc   :  { %3629 = vmatprep.subr.bf16.mxu0 %v4684_v60  ;;  %3667 = vmatpush1.bf16.msra.mxu1 %v4693_v4  ;;  %v4721_v8 = vpack.c.bf16 %v790_v61, %v789_v56  ;;  %v4733_v56 = vpack.c.bf16 %v828_v33, %v827_v32  ;;  %v793_v61 = vld [vmem:[#allocation4 + $0x240] sm:$0xff]  ;;  %v795_v32 = vld [vmem:[#allocation4 + $0x250] sm:$0xff]  ;;  %v4747_v33 = vpack.c.bf16 %v812_v10, %v811_v24 }
 0x1cd   :  { %3668 = vmatprep.subr.bf16.mxu1 %v5493_v27  ;;  %v4741_v13 = vpack.c.bf16 %v794_v1, %v793_v61  ;;  %v4753_v61 = vpack.c.bf16 %v832_v62, %v831_v38  ;;  %v833_v1 = vld [vmem:[#allocation4 + $0x380] sm:$0xff]  ;;  %v835_v24 = vld [vmem:[#allocation4 + $0x390] sm:$0xff]  ;;  %v838_v38 = vld [vmem:[#allocation4 + $0x3a8] sm:$0xff] }
 0x1ce   :  { %v4759_v10 = vpack.c.bf16 %v834_v5, %v833_v1  ;;  %v566_v62 = vld [vmem:[#allocation2 + $0x28] sm:$0xff] }
 0x1cf   :  { %3631 = vmatpush3.bf16.msra.mxu0 %v4691_v2 }
 0x1d0   :  { %3633 = vmatprep.subr.bf16.mxu0 %v4696_v6  ;;  %3670 = vmatpush1.bf16.msra.mxu1 %v4703_v21 }
 0x1d1   :  { %3671 = vmatprep.subr.bf16.mxu1 %v5493_v27 }
 0x1d3   :  { %3635 = vmatpush3.bf16.msra.mxu0 %v4701_v19 }
 0x1d4   :  { %3637 = vmatprep.subr.bf16.mxu0 %v4707_v29  ;;  %3673 = vmatpush1.bf16.msra.mxu1 %v4713_v53 }
 0x1d5   :  { %3674 = vmatprep.subr.bf16.mxu1 %v5493_v27 }
 0x1d7   :  { %3639 = vmatpush3.bf16.msra.mxu0 %v4711_v50 }
 0x1d8   :  { %3641 = vmatprep.subr.bf16.mxu0 %v4717_v57  ;;  %3676 = vmatpush1.bf16.msra.mxu1 %v4723_v12  ;;  %v4751_v12 = vpack.c.bf16 %v796_v34, %v795_v32  ;;  %v4766_v32 = vpack.c.bf16 %v836_v7, %v835_v24  ;;  %v837_v34 = vld [vmem:[#allocation4 + $0x3a0] sm:$0xff] }
 0x1d9   :  { %3677 = vmatprep.subr.bf16.mxu1 %v5493_v27 }
 0x1db   :  { %3643 = vmatpush3.bf16.msra.mxu0 %v4721_v8 }
 0x1dc   :  { %3645 = vmatprep.subr.bf16.mxu0 %v4727_v16  ;;  %3679 = vmatpush1.bf16.msra.mxu1 %v4733_v56 }
 0x1dd   :  { %3680 = vmatprep.subr.bf16.mxu1 %v5493_v27 }
 0x1df   :  { %3647 = vmatpush3.bf16.msra.mxu0 %v4731_v42 }
 0x1e0   :  { %3649 = vmatprep.subr.bf16.mxu0 %v4737_v0  ;;  %3682 = vmatpush1.bf16.msra.mxu1 %v4743_v25 }
 0x1e1   :  { %3683 = vmatprep.subr.bf16.mxu1 %v5493_v27 }
 0x1e3   :  { %3651 = vmatpush3.bf16.msra.mxu0 %v4741_v13 }
 0x1e4   :  { %3653 = vmatprep.subr.bf16.mxu0 %v4747_v33  ;;  %3685 = vmatpush1.bf16.msra.mxu1 %v4753_v61 }
 0x1e5   :  { %3686 = vmatprep.subr.bf16.mxu1 %v5493_v27 }
 0x1e7   :  { %3655 = vmatpush3.bf16.msra.mxu0 %v4751_v12 }
 0x1e8   :  { %3699 = vmatprep.subr.bf16.mxu0 %v4499_v36  ;;  %3688 = vmatpush1.bf16.msra.mxu1 %v4759_v10  ;;  %v4772_v36 = vpack.c.bf16 %v838_v38, %v837_v34 }
 0x1e9   :  { %3689 = vmatprep.subr.bf16.mxu1 %v5493_v27 }
 0x1ea   :  { %906 = vmatmul.mubr.f32.vlgmr.msra.gmra.mrb[8].mxu0 %v4686_v63  ;;  %v840_v63 = vld [vmem:[#allocation4 + $0x3b8] sm:$0xff] }
 0x1eb   :  { %3701 = vmatpush3.bf16.msra.mxu0 %v4504_v40  ;;  %1050 = vmatprep.mubr.f32.mxu0 %v566_v62  ;;  %v839_v40 = vld [vmem:[#allocation4 + $0x3b0] sm:$0xff] }
 0x1ec   :  { %3703 = vmatprep.subr.bf16.mxu0 %v4538_v14  ;;  %3691 = vmatpush1.bf16.msra.mxu1 %v4766_v32  ;;  %v4778_v1 = vpack.c.bf16 %v840_v63, %v839_v40  ;;  %v565_v14 = vld [vmem:[#allocation2 + $0x20] sm:$0xff]  ;;  %v1370_v63 = vld [vmem:[#allocation7 + $0xc0] sm:$0xff] }
 0x1ed   :  { %3692 = vmatprep.subr.bf16.mxu1 %v5493_v27 }
 0x1ef   :  { %3705 = vmatpush3.bf16.msra.mxu0 %v4544_v18  ;;  %v568_v18 = vld [vmem:[#allocation2 + $0x38] sm:$0xff] }
 0x1f0   :  { %3707 = vmatprep.subr.bf16.mxu0 %v4551_v26  ;;  %3694 = vmatpush1.bf16.msra.mxu1 %v4772_v36 }
 0x1f1   :  { %3695 = vmatprep.subr.bf16.mxu1 %v5493_v27 }
 0x1f3   :  { %3709 = vmatpush3.bf16.msra.mxu0 %v4554_v35 }
 0x1f4   :  { %3711 = vmatprep.subr.bf16.mxu0 %v4561_v51  ;;  %3697 = vmatpush1.bf16.msra.mxu1 %v4778_v1  ;;  %v1362_v51 = vld [vmem:[#allocation7 + $0x80] sm:$0xff] }
 0x1f5   :  { %3773 = vmatprep.subr.bf16.mxu1 %v4622_v54  ;;  %v1349_v54 = vld [vmem:[#allocation7 + $0x18] sm:$0xff] }
 0x1f7   :  { %3713 = vmatpush3.bf16.msra.mxu0 %v4564_v59  ;;  %976 = vmatmul.mubr.f32.vlgmr.msra.gmra.mrb[4].mxu1 %v4659_v17  ;;  %v1363_v59 = vld [vmem:[#allocation7 + $0x88] sm:$0xff] }
 0x1f8   :  { %3715 = vmatprep.subr.bf16.mxu0 %v4575_v3  ;;  %3775 = vmatpush3.bf16.msra.mxu1 %v4679_v45  ;;  %v1346_v3 = vld [vmem:[#allocation7] sm:$0xff]  ;;  %v1367_v17 = vld [vmem:[#allocation7 + $0xa8] sm:$0xff] }
 0x1f9   :  { %1192 = vmatprep.mubr.f32.mxu1 %v566_v62  ;;  %3777 = vmatprep.subr.bf16.mxu1 %v4684_v60 }
 0x1fb   :  { %3717 = vmatpush3.bf16.msra.mxu0 %v4582_v9  ;;  %v4874_v9 = vpack.c.bf16 %v1363_v59, %v1362_v51  ;;  %v1413_v51 = vld [vmem:[#allocation7 + $0x218] sm:$0xff] }
 0x1fc   :  { %3719 = vmatprep.subr.bf16.mxu0 %v4590_v15  ;;  %3779 = vmatpush3.bf16.msra.mxu1 %v4691_v2  ;;  %v1347_v15 = vld [vmem:[#allocation7 + $0x8] sm:$0xff]  ;;  %v1350_v2 = vld [vmem:[#allocation7 + $0x20] sm:$0xff] }
 0x1fd   :  { %3781 = vmatprep.subr.bf16.mxu1 %v4696_v6 }
 0x1ff   :  { %3721 = vmatpush3.bf16.msra.mxu0 %v4594_v22  ;;  %v1364_v22 = vld [vmem:[#allocation7 + $0x90] sm:$0xff] }
 0x200   :  { %3723 = vmatprep.subr.bf16.mxu0 %v4603_v30  ;;  %3783 = vmatpush3.bf16.msra.mxu1 %v4701_v19  ;;  %v1365_v30 = vld [vmem:[#allocation7 + $0x98] sm:$0xff]  ;;  %v1368_v19 = vld [vmem:[#allocation7 + $0xb0] sm:$0xff] }
 0x201   :  { %3785 = vmatprep.subr.bf16.mxu1 %v4707_v29 }
 0x203   :  { %3725 = vmatpush3.bf16.msra.mxu0 %v4607_v37  ;;  %v4876_v37 = vpack.c.bf16 %v1347_v15, %v1346_v3 }
 0x204   :  { %3727 = vmatprep.subr.bf16.mxu0 %v4613_v44  ;;  %3787 = vmatpush3.bf16.msra.mxu1 %v4711_v50  ;;  %v4878_v44 = vpack.c.bf16 %v1365_v30, %v1364_v22  ;;  %v4918_v22 = vld [vmem:[#allocation3] sm:$0xff]  ;;  %v1374_v30 = vld [vmem:[#allocation7 + $0xe0] sm:$0xff] }
 0x205   :  { %3789 = vmatprep.subr.bf16.mxu1 %v4717_v57  ;;  %v1353_v57 = vld [vmem:[#allocation7 + $0x38] sm:$0xff]  ;;  %79 = vst.msk [vmem:[#allocation3 + $0x10] sm:$0xf] %vm78_vm12, %v4918_v22  ;;  %82 = vst.msk [vmem:[#allocation3 + $0x24] sm:$0xf] %vm78_vm12, %v4918_v22  ;;  %vm1431_vm12 = vcmask 523264  }
 0x207   :  { %3729 = vmatpush3.bf16.msra.mxu0 %v4616_v48  ;;  %v1348_v48 = vld [vmem:[#allocation7 + $0x10] sm:$0xff] }
 0x208   :  { %3730 = vmatprep.subr.bf16.mxu0 %v5493_v27  ;;  %3791 = vmatpush3.bf16.msra.mxu1 %v4721_v8  ;;  %v4882_v45 = vpack.c.bf16 %v1349_v54, %v1348_v48  ;;  %v1375_v48 = vld [vmem:[#allocation7 + $0xe8] sm:$0xff] }
 0x209   :  { %3793 = vmatprep.subr.bf16.mxu1 %v4727_v16 }
 0x20a   :  { %1051 = vmatmul.mubr.f32.vlgmr.msra.gmra.mrb[10].mxu0 %v565_v14 }
 0x20b   :  { %3732 = vmatpush1.bf16.msra.mxu0 %v4483_v28  ;;  %2685 = vmatprep.mubr.msk.f32.mxu0 %vm70_vm2, %v568_v18  ;;  %v5508_v28 = vld [vmem:[#allocation16_spill] sm:$0xff] }
 0x20c   :  { %3733 = vmatprep.subr.bf16.mxu0 %v5493_v27  ;;  %3795 = vmatpush3.bf16.msra.mxu1 %v4731_v42 }
 0x20d   :  { %3797 = vmatprep.subr.bf16.mxu1 %v4737_v0 }
 0x20f   :  { %3735 = vmatpush1.bf16.msra.mxu0 %v4496_v31  ;;  %v5509_v31 = vld [vmem:[#allocation13_spill] sm:$0xff] }
 0x210   :  { %3736 = vmatprep.subr.bf16.mxu0 %v5493_v27  ;;  %3799 = vmatpush3.bf16.msra.mxu1 %v4741_v13 }
 0x211   :  { %3801 = vmatprep.subr.bf16.mxu1 %v4747_v33 }
 0x213   :  { %3738 = vmatpush1.bf16.msra.mxu0 %v4502_v39  ;;  %v5510_v39 = vld [vmem:[#allocation14_spill] sm:$0xff] }
 0x214   :  { %3739 = vmatprep.subr.bf16.mxu0 %v5493_v27  ;;  %3803 = vmatpush3.bf16.msra.mxu1 %v4751_v12 }
 0x215   :  { %3804 = vmatprep.subr.bf16.mxu1 %v5493_v27 }
 0x217   :  { %3741 = vmatpush1.bf16.msra.mxu0 %v4510_v43  ;;  %1193 = vmatmul.mubr.f32.vlgmr.msra.gmra.mrb[6].mxu1 %v565_v14  ;;  %v5511_v43 = vld [vmem:[#allocation15_spill] sm:$0xff] }
 0x218   :  { %3742 = vmatprep.subr.bf16.mxu0 %v5493_v27  ;;  %3806 = vmatpush1.bf16.msra.mxu1 %v4653_v11  ;;  %v1366_v11 = vld [vmem:[#allocation7 + $0xa0] sm:$0xff] }
 0x219   :  { %2686 = vmatprep.mubr.msk.f32.mxu1 %vm70_vm2, %v568_v18  ;;  %3807 = vmatprep.subr.bf16.mxu1 %v5493_v27  ;;  %v4885_v60 = vpack.c.bf16 %v1367_v17, %v1366_v11  ;;  %v1354_v18 = vld [vmem:[#allocation7 + $0x40] sm:$0xff]  ;;  %v4923_v11 = vpack.c.bf16 %v1375_v48, %v1374_v30 }
 0x21a   :  { %v1358_v17 = vld [vmem:[#allocation7 + $0x60] sm:$0xff] }
 0x21b   :  { %3744 = vmatpush1.bf16.msra.mxu0 %v4514_v46  ;;  %v567_v46 = vld [vmem:[#allocation2 + $0x30] sm:$0xff] }
 0x21c   :  { %3745 = vmatprep.subr.bf16.mxu0 %v5493_v27  ;;  %3809 = vmatpush1.bf16.msra.mxu1 %v4669_v23 }
 0x21d   :  { %3810 = vmatprep.subr.bf16.mxu1 %v5493_v27 }
 0x21f   :  { %3747 = vmatpush1.bf16.msra.mxu0 %v4518_v49 }
 0x220   :  { %3748 = vmatprep.subr.bf16.mxu0 %v5493_v27  ;;  %3812 = vmatpush1.bf16.msra.mxu1 %v4681_v47 }
 0x221   :  { %3813 = vmatprep.subr.bf16.mxu1 %v5493_v27 }
 0x223   :  { %3750 = vmatpush1.bf16.msra.mxu0 %v4522_v52 }
 0x224   :  { %3751 = vmatprep.subr.bf16.mxu0 %v5493_v27  ;;  %3815 = vmatpush1.bf16.msra.mxu1 %v4693_v4  ;;  %v1351_v4 = vld [vmem:[#allocation7 + $0x28] sm:$0xff] }
 0x225   :  { %3816 = vmatprep.subr.bf16.mxu1 %v5493_v27  ;;  %v4888_v29 = vpack.c.bf16 %v1351_v4, %v1350_v2  ;;  %v1414_v2 = vld [vmem:[#allocation7 + $0x220] sm:$0xff]  ;;  %v1415_v4 = vld [vmem:[#allocation7 + $0x228] sm:$0xff] }
 0x227   :  { %3753 = vmatpush1.bf16.msra.mxu0 %v4526_v55 }
 0x228   :  { %3754 = vmatprep.subr.bf16.mxu0 %v5493_v27  ;;  %3818 = vmatpush1.bf16.msra.mxu1 %v4703_v21  ;;  %v1369_v21 = vld [vmem:[#allocation7 + $0xb8] sm:$0xff] }
 0x229   :  { %3819 = vmatprep.subr.bf16.mxu1 %v5493_v27  ;;  %v4891_v50 = vpack.c.bf16 %v1369_v21, %v1368_v19  ;;  %v4930_v19 = vpack.c.bf16 %v1415_v4, %v1414_v2  ;;  %v1376_v21 = vld [vmem:[#allocation7 + $0xf0] sm:$0xff] }
 0x22b   :  { %3756 = vmatpush1.bf16.msra.mxu0 %v4530_v58  ;;  %v4871_v58 = vld [vmem:[%s5479_s4] ss:$0 sm:$0xff]  ;;  %s4324_s4 = smov 96  }
 0x22c   :  { %3757 = vmatprep.subr.bf16.mxu0 %v5493_v27  ;;  %3821 = vmatpush1.bf16.msra.mxu1 %v4713_v53  ;;  %v1352_v53 = vld [vmem:[#allocation7 + $0x30] sm:$0xff] }
 0x22d   :  { %3822 = vmatprep.subr.bf16.mxu1 %v5493_v27  ;;  %v4894_v8 = vpack.c.bf16 %v1353_v57, %v1352_v53  ;;  %v1377_v53 = vld [vmem:[#allocation7 + $0xf8] sm:$0xff] }
 0x22f   :  { %3759 = vmatpush1.bf16.msra.mxu0 %v4547_v20 }
 0x230   :  { %3760 = vmatprep.subr.bf16.mxu0 %v5493_v27  ;;  %3824 = vmatpush1.bf16.msra.mxu1 %v5508_v28  ;;  %v1355_v28 = vld [vmem:[#allocation7 + $0x48] sm:$0xff] }
 0x231   :  { %3825 = vmatprep.subr.bf16.mxu1 %v5493_v27 }
 0x233   :  { %3762 = vmatpush1.bf16.msra.mxu0 %v4557_v41 }
 0x234   :  { %3763 = vmatprep.subr.bf16.mxu0 %v5493_v27  ;;  %3827 = vmatpush1.bf16.msra.mxu1 %v4733_v56 }
 0x235   :  { %3828 = vmatprep.subr.bf16.mxu1 %v5493_v27 }
 0x237   :  { %3765 = vmatpush1.bf16.msra.mxu0 %v5509_v31  ;;  %v4902_v31 = vpack.c.bf16 %v1355_v28, %v1354_v18  ;;  %v1398_v28 = vld [vmem:[#allocation7 + $0x1a0] sm:$0xff] }
 0x238   :  { %3766 = vmatprep.subr.bf16.mxu0 %v5493_v27  ;;  %3830 = vmatpush1.bf16.msra.mxu1 %v4743_v25 }
 0x239   :  { %3831 = vmatprep.subr.bf16.mxu1 %v5493_v27 }
 0x23b   :  { %3768 = vmatpush1.bf16.msra.mxu0 %v5510_v39  ;;  %v1410_v39 = vld [vmem:[#allocation7 + $0x200] sm:$0xff] }
 0x23c   :  { %3769 = vmatprep.subr.bf16.mxu0 %v5493_v27  ;;  %3833 = vmatpush1.bf16.msra.mxu1 %v4753_v61 }
 0x23d   :  { %3834 = vmatprep.subr.bf16.mxu1 %v5493_v27 }
 0x23f   :  { %3771 = vmatpush1.bf16.msra.mxu0 %v5511_v43  ;;  %v1411_v43 = vld [vmem:[#allocation7 + $0x208] sm:$0xff] }
 0x240   :  { %3836 = vmatpush1.bf16.msra.mxu1 %v4759_v10  ;;  %3847 = vmatprep.subr.bf16.mxu0 %v4874_v9 }
 0x241   :  { %3837 = vmatprep.subr.bf16.mxu1 %v5493_v27 }
 0x242   :  { %1121 = vmatmul.mubr.f32.vlgmr.msra.gmra.mrb[12].mxu0 %v567_v46 }
 0x243   :  { %3849 = vmatpush3.bf16.msra.mxu0 %v4876_v37 }
 0x244   :  { %3839 = vmatpush1.bf16.msra.mxu1 %v4766_v32  ;;  %3851 = vmatprep.subr.bf16.mxu0 %v4878_v44 }
 0x245   :  { %3840 = vmatprep.subr.bf16.mxu1 %v5493_v27 }
 0x247   :  { %3853 = vmatpush3.bf16.msra.mxu0 %v4882_v45 }
 0x248   :  { %3842 = vmatpush1.bf16.msra.mxu1 %v4772_v36  ;;  %3855 = vmatprep.subr.bf16.mxu0 %v4885_v60 }
 0x249   :  { %3843 = vmatprep.subr.bf16.mxu1 %v5493_v27 }
 0x24b   :  { %3857 = vmatpush3.bf16.msra.mxu0 %v4888_v29 }
 0x24c   :  { %3845 = vmatpush1.bf16.msra.mxu1 %v4778_v1  ;;  %3859 = vmatprep.subr.bf16.mxu0 %v4891_v50  ;;  %v1371_v1 = vld [vmem:[#allocation7 + $0xc8] sm:$0xff] }
 0x24d   :  { %3910 = vmatprep.subr.bf16.mxu1 %v5493_v27  ;;  %v4900_v14 = vpack.c.bf16 %v1371_v1, %v1370_v63 }
 0x24f   :  { %1263 = vmatmul.mubr.f32.vlgmr.msra.gmra.mrb[8].mxu1 %v567_v46  ;;  %3861 = vmatpush3.bf16.msra.mxu0 %v4894_v8  ;;  %v4906_v46 = vpack.c.bf16 %v1411_v43, %v1410_v39 }
 0x250   :  { %3863 = vmatprep.subr.bf16.mxu0 %v4900_v14  ;;  %3337 = vmatprep.mubr.msk.f32.mxu1 %vm4326_vm13, %v4918_v22 }
 0x251   :  { %3912 = vmatpush3.bf16.msra.mxu1 %v4906_v46 }
 0x252   :  { %3913 = vmatprep.subr.bf16.mxu1 %v5493_v27 }
 0x253   :  { %3865 = vmatpush3.bf16.msra.mxu0 %v4902_v31 }
 0x291   :  { %v775_v49 = vpop.f32.mrb[2].mxu1 }
 0x292   :  { %v777_v52 = vpop.f32.mrb[3].mxu1 }
 0x293   :  { %v1373_v52 = vld [vmem:[#allocation7 + $0xd8] sm:$0xff] }
 0x29d   :  { %v2778_v55 = vpop.f32.mrb[6].mxu0 }
 0x29e   :  { %v2779_v20 = vpop.f32.mrb[7].mxu0 }
 0x29f   :  { %v2780_v26 = vadd.f32 %v2779_v20, %v2778_v55  ;;  %v1356_v20 = vld [vmem:[#allocation7 + $0x50] sm:$0xff] }
 0x2a1   :  { %v706_v35 = vadd.f32 %v2780_v26, %v4871_v58  ;;  %v1357_v26 = vld [vmem:[#allocation7 + $0x58] sm:$0xff] }
 0x2a3   :  { %v776_v41 = vadd.f32 %v775_v49, %v706_v35  ;;  %v1372_v49 = vld [vmem:[#allocation7 + $0xd0] sm:$0xff]  ;;  %v4911_v35 = vpack.c.bf16 %v1357_v26, %v1356_v20  ;;  %v1699_v26 = vld [vmem:[#allocation7 + $0x3e8] sm:$0xff] }
 0x2a4   :  { %v4908_v55 = vpack.c.bf16 %v1373_v52, %v1372_v49 }
 0x2a5   :  { %v779_v0 = vmax.f32 %v776_v41, 0.0  ;;  %v1412_v41 = vld [vmem:[#allocation7 + $0x210] sm:$0xff] }
 0x2a6   :  { %3867 = vmatprep.subr.bf16.mxu0 %v4908_v55  ;;  %v4916_v3 = vpack.c.bf16 %v1413_v51, %v1412_v41 }
 0x2a7   :  { %3869 = vmatpush3.bf16.msra.mxu0 %v4911_v35 }
 0x2a8   :  { %3915 = vmatpush3.bf16.msra.mxu1 %v4916_v3  ;;  %3871 = vmatprep.subr.bf16.mxu0 %v4923_v11 }
 0x2a9   :  { %3916 = vmatprep.subr.bf16.mxu1 %v5493_v27 }
 0x2ac   :  { %3918 = vmatpush3.bf16.msra.mxu1 %v4930_v19 }
 0x2ad   :  { %3919 = vmatprep.subr.bf16.mxu1 %v5493_v27  ;;  %v1408_v27 = vld [vmem:[#allocation7 + $0x1f0] sm:$0xff] }
 0x2bd   :  { %v2813_v23 = vpop.f32.mrb[8].mxu0 }
 0x2be   :  { %v2814_v47 = vpop.f32.mrb[9].mxu0 }
 0x2bf   :  { %v2815_v6 = vadd.f32 %v2814_v47, %v2813_v23  ;;  %v1359_v23 = vld [vmem:[#allocation7 + $0x68] sm:$0xff] }
 0x2c0   :  { %v4926_v47 = vpack.c.bf16 %v1359_v23, %v1358_v17 }
 0x2c1   :  { %v908_v12 = vadd.f32 %v2815_v6, %v4871_v58 }
 0x2c2   :  { %3873 = vmatpush3.bf16.msra.mxu0 %v4926_v47 }
 0x2ca   :  { %v977_v16 = vpop.f32.mrb[4].mxu1 }
 0x2cb   :  { %v978_v42 = vadd.f32 %v977_v16, %v908_v12  ;;  %v979_v56 = vpop.f32.mrb[5].mxu1  ;;  %v4933_v12 = vpack.c.bf16 %v1377_v53, %v1376_v21  ;;  %v1360_v16 = vld [vmem:[#allocation7 + $0x70] sm:$0xff]  ;;  %v1378_v53 = vld [vmem:[#allocation7 + $0x100] sm:$0xff] }
 0x2cd   :  { %v981_v13 = vmax.f32 %v978_v42, 0.0  ;;  %v1361_v42 = vld [vmem:[#allocation7 + $0x78] sm:$0xff]  ;;  %3875 = vmatprep.subr.bf16.mxu0 %v4933_v12 }
 0x2ce   :  { %v4936_v56 = vpack.c.bf16 %v1361_v42, %v1360_v16  ;;  %v1678_v16 = vld [vmem:[#allocation7 + $0x340] sm:$0xff]  ;;  %v1679_v42 = vld [vmem:[#allocation7 + $0x348] sm:$0xff] }
 0x2cf   :  { %v982_v25 = vmax.f32 %v779_v0, %v981_v13  ;;  %v1416_v0 = vld [vmem:[#allocation7 + $0x230] sm:$0xff]  ;;  %v1417_v13 = vld [vmem:[#allocation7 + $0x238] sm:$0xff] }
 0x2d0   :  { %3877 = vmatpush3.bf16.msra.mxu0 %v4936_v56 }
 0x2dd   :  { %v2848_v33 = vpop.f32.mrb[10].mxu0 }
 0x2de   :  { %v2849_v61 = vpop.f32.mrb[11].mxu0 }
 0x2df   :  { %v2850_v5 = vadd.f32 %v2849_v61, %v2848_v33  ;;  %v4938_v61 = vpack.c.bf16 %v1417_v13, %v1416_v0  ;;  %v1396_v0 = vld [vmem:[#allocation7 + $0x190] sm:$0xff]  ;;  %v1397_v13 = vld [vmem:[#allocation7 + $0x198] sm:$0xff] }
 0x2e0   :  { %v5006_v63 = vpack.c.bf16 %v1397_v13, %v1396_v0  ;;  %v1684_v0 = vld [vmem:[#allocation7 + $0x370] sm:$0xff] }
 0x2e1   :  { %v1053_v62 = vadd.f32 %v2850_v5, %v4871_v58  ;;  %v1394_v5 = vld [vmem:[#allocation7 + $0x180] sm:$0xff]  ;;  %3921 = vmatpush3.bf16.msra.mxu1 %v4938_v61 }
 0x2ea   :  { %v2883_v10 = vpop.f32.mrb[6].mxu1 }
 0x2eb   :  { %v2884_v24 = vpop.f32.mrb[7].mxu1 }
 0x2ec   :  { %v2885_v7 = vadd.f32 %v2884_v24, %v2883_v10  ;;  %v1395_v10 = vld [vmem:[#allocation7 + $0x188] sm:$0xff] }
 0x2ee   :  { %v1195_v59 = vadd.f32 %v2885_v7, %v4871_v58 }
 0x315   :  { %v1122_v32 = vpop.f32.mrb[12].mxu0 }
 0x316   :  { %v1123_v34 = vadd.f32 %v1122_v32, %v1053_v62  ;;  %v1124_v38 = vpop.f32.mrb[13].mxu0  ;;  %v4943_v62 = vpack.c.bf16 %v1395_v10, %v1394_v5  ;;  %v1694_v32 = vld [vmem:[#allocation7 + $0x3c0] sm:$0xff] }
 0x318   :  { %v1126_v36 = vmax.f32 %v1123_v34, 0.0  ;;  %v1695_v34 = vld [vmem:[#allocation7 + $0x3c8] sm:$0xff]  ;;  %3879 = vmatprep.subr.bf16.mxu0 %v4943_v62 }
 0x319   :  { %v4946_v38 = vpack.c.bf16 %v1695_v34, %v1694_v32  ;;  %v1696_v32 = vld [vmem:[#allocation7 + $0x3d0] sm:$0xff]  ;;  %v1697_v34 = vld [vmem:[#allocation7 + $0x3d8] sm:$0xff] }
 0x31a   :  { %v1127_v40 = vmax.f32 %v982_v25, %v1126_v36  ;;  %v1680_v36 = vld [vmem:[#allocation7 + $0x350] sm:$0xff] }
 0x31b   :  { %3955 = vmatprep.subr.bf16.mxu1 %v4946_v38 }
 0x322   :  { %v1264_v15 = vpop.f32.mrb[8].mxu1 }
 0x323   :  { %v1265_v54 = vadd.f32 %v1264_v15, %v1195_v59  ;;  %v1266_v58 = vpop.f32.mrb[9].mxu1 }
 0x325   :  { %v1268_v6 = vmax.f32 %v1265_v54, 0.0 }
 0x327   :  { %v1269_v57 = vmax.f32 %v1127_v40, %v1268_v6 }
 0x329   :  { %1271 = vrot.lane.b32.xlu1 %v1269_v57, %s4324_s4  ;;  %1280 = vrot.lane.b32.xlu0 %v1269_v57, %s4325_s3  ;;  %v1309_v25 = vcombine.high %v1269_v57, %v1269_v57  ;;  %v1295_v33 = vrot.slane %v1269_v57, 6  ;;  %v1379_v57 = vld [vmem:[#allocation7 + $0x108] sm:$0xff] }
 0x32b   :  { %v1310_v24 = vrot.slane %v1309_v25, 6  ;;  %v1296_v7 = vrot.slane %v1295_v33, 4 }
 0x32d   :  { %1311 = vrot.lane.b32.xlu0 %v1310_v24, %s4324_s4  ;;  %1297 = vrot.lane.b32.xlu1 %v1296_v7, %s4325_s3 }
 0x331   :  { %1326 = vrot.lane.b32.xlu0 %v1309_v25, %s4325_s3  ;;  %1320 = vrot.lane.b32.xlu1 %v1310_v24, %s4325_s3  ;;  %v5002_v24 = vpack.c.bf16 %v1379_v57, %v1378_v53 }
 0x335   :  { %1303 = vrot.lane.b32.xlu0 %v1296_v7, %s4324_s4  ;;  %1333 = vrot.lane.b32.xlu1 %v1309_v25, %s4324_s4  ;;  %v1380_v7 = vld [vmem:[#allocation7 + $0x110] sm:$0xff]  ;;  %s4327_s4 = smov [#allocation9]  }
 0x336   :  { %s2650_s3 = sshll.u32 %s4327_s4, 4  ;;  %s2651_s3 = int_to_ptr.vmem [resolvable:$true] %s2650_s3 }
 0x337   :  { %p4292_p3 = scmp.lt.s32.totalorder %s2651_s3, %s2651_s3 }
 0x39b   :  { %v1272_v40 = vpop.permute.xlu1 %1271  ;;  %v1281_v1 = vpop.permute.xlu0 %1280 }
 0x39c   :  { %v1273_v18 = vrot.slane %v1272_v40, 4  ;;  %v1282_v39 = vrot.slane %v1281_v1, 4 }
 0x39e   :  { %v1274_v43 = vsel %vm70_vm2, %v1273_v18, %v1272_v40  ;;  %v1284_v49 = vsel %vm1283_vm11, %v1282_v39, %v1281_v1  ;;  %v5004_v40 = vpack.c.bf16 %v1679_v42, %v1678_v16  ;;  %v1381_v1 = vld [vmem:[#allocation7 + $0x118] sm:$0xff]  ;;  %v1399_v39 = vld [vmem:[#allocation7 + $0x1a8] sm:$0xff]  ;;  %v1384_v16 = vld [vmem:[#allocation7 + $0x130] sm:$0xff] }
 0x39f   :  { %1279 = vst.msk [vmem:[#allocation3 + $0x4] sm:$0x33] %vm4952_vm5, %v1274_v43  ;;  %v1312_v52 = vpop.permute.xlu0 %1311  ;;  %v1298_v20 = vpop.permute.xlu1 %1297  ;;  %v1681_v18 = vld [vmem:[#allocation7 + $0x358] sm:$0xff]  ;;  %v1698_v43 = vld [vmem:[#allocation7 + $0x3e0] sm:$0xff] }
 0x3a0   :  { %1290 = vst.msk [vmem:[#allocation3 + $0x14] sm:$0x33] %vm4956_vm6, %v1284_v49  ;;  %v1313_v41 = vrot.slane %v1312_v52, 4  ;;  %v1299_v51 = vrot.slane %v1298_v20, 4  ;;  %v1385_v42 = vld [vmem:[#allocation7 + $0x138] sm:$0xff] }
 0x3a1   :  { %1294 = vst.msk [vmem:[#allocation3] sm:$0xcc] %vm4960_vm7, %v1284_v49 }
 0x3a2   :  { %v1314_v59 = vsel %vm70_vm2, %v1313_v41, %v1312_v52  ;;  %v1300_v15 = vsel %vm1283_vm11, %v1299_v51, %v1298_v20  ;;  %v5014_v20 = vpack.c.bf16 %v1697_v34, %v1696_v32  ;;  %v5021_v51 = vpack.c.bf16 %v1381_v1, %v1380_v7  ;;  %v1403_v7 = vld [vmem:[#allocation7 + $0x1c8] sm:$0xff]  ;;  %v1702_v32 = vld [vmem:[#allocation7 + $0x400] sm:$0xff] }
 0x3a3   :  { %1319 = vst.msk [vmem:[#allocation3 + $0x4] sm:$0xcc] %vm4972_vm9, %v1314_v59  ;;  %v1327_v30 = vpop.permute.xlu0 %1326  ;;  %v1321_v48 = vpop.permute.xlu1 %1320  ;;  %v5025_v59 = vpack.c.bf16 %v1681_v18, %v1680_v36  ;;  %v1703_v34 = vld [vmem:[#allocation7 + $0x408] sm:$0xff]  ;;  %v5045_v1 = vpack.c.bf16 %v1385_v42, %v1384_v16  ;;  %v1389_v16 = vld [vmem:[#allocation7 + $0x158] sm:$0xff]  ;;  %v1688_v42 = vld [vmem:[#allocation7 + $0x390] sm:$0xff] }
 0x3a4   :  { %1302 = vst.msk [vmem:[#allocation3 + $0xc] sm:$0x33] %vm4956_vm6, %v1300_v15  ;;  %v1328_v54 = vrot.slane %v1327_v30, 4  ;;  %v1322_v58 = vrot.slane %v1321_v48, 4  ;;  %v5027_v15 = vpack.c.bf16 %v1399_v39, %v1398_v28  ;;  %v1386_v28 = vld [vmem:[#allocation7 + $0x140] sm:$0xff]  ;;  %v1387_v39 = vld [vmem:[#allocation7 + $0x148] sm:$0xff] }
 0x3a6   :  { %v1329_v17 = vsel %vm1283_vm11, %v1328_v54, %v1327_v30  ;;  %v1323_v23 = vsel %vm1283_vm11, %v1322_v58, %v1321_v48  ;;  %v1382_v30 = vld [vmem:[#allocation7 + $0x120] sm:$0xff]  ;;  %v1383_v48 = vld [vmem:[#allocation7 + $0x128] sm:$0xff]  ;;  %v5029_v58 = vpack.c.bf16 %v1699_v26, %v1698_v43  ;;  %v5054_v26 = vpack.c.bf16 %v1703_v34, %v1702_v32 }
 0x3a7   :  { %1331 = vst.msk [vmem:[#allocation3 + $0x20] sm:$0x33] %vm4956_vm6, %v1329_v17  ;;  %v1304_v2 = vpop.permute.xlu0 %1303  ;;  %v1334_v4 = vpop.permute.xlu1 %1333  ;;  %v1682_v54 = vld [vmem:[#allocation7 + $0x360] sm:$0xff]  ;;  %v1707_v34 = vld [vmem:[#allocation7 + $0x428] sm:$0xff] }
 0x3a8   :  { %1332 = vst.msk [vmem:[#allocation3 + $0xc] sm:$0xcc] %vm4960_vm7, %v1329_v17  ;;  %1325 = vst.msk [vmem:[#allocation3 + $0x14] sm:$0xcc] %vm4960_vm7, %v1323_v23  ;;  %v1305_v6 = vrot.slane %v1304_v2, 4  ;;  %v1335_v21 = vrot.slane %v1334_v4, 4 }
 0x3a9   :  { %v1683_v17 = vld [vmem:[#allocation7 + $0x368] sm:$0xff]  ;;  %v1400_v23 = vld [vmem:[#allocation7 + $0x1b0] sm:$0xff]  ;;  %v1686_v43 = vld [vmem:[#allocation7 + $0x380] sm:$0xff] }
 0x3aa   :  { %v1306_v25 = vsel %vm70_vm2, %v1305_v6, %v1304_v2  ;;  %v1336_v33 = vsel %vm70_vm2, %v1335_v21, %v1334_v4  ;;  %v4992_v5 = vld [vmem:[#allocation3] sm:$0xff]  ;;  %v1700_v4 = vld [vmem:[#allocation7 + $0x3f0] sm:$0xff]  ;;  %v5033_v21 = vpack.c.bf16 %v1383_v48, %v1382_v30  ;;  %v5037_v53 = vpack.c.bf16 %v1683_v17, %v1682_v54  ;;  %v1706_v32 = vld [vmem:[#allocation7 + $0x420] sm:$0xff] }
 0x3ab   :  { %1308 = vst.msk [vmem:[#allocation3 + $0x18] sm:$0x33] %vm4952_vm5, %v1306_v25  ;;  %v5000_v10 = vcombine.high %v4992_v5, %v4992_v5  ;;  %v1401_v2 = vld [vmem:[#allocation7 + $0x1b8] sm:$0xff]  ;;  %v1404_v30 = vld [vmem:[#allocation7 + $0x1d0] sm:$0xff]  ;;  %vm2642_vm2 = vcmask 9216  }
 0x3ac   :  { %1338 = vst.msk [vmem:[#allocation3 + $0x18] sm:$0xcc] %vm4972_vm9, %v1336_v33  ;;  %v1701_v6 = vld [vmem:[#allocation7 + $0x3f8] sm:$0xff]  ;;  %v5039_v57 = vpack.c.bf16 %v1401_v2, %v1400_v23  ;;  %v1402_v33 = vld [vmem:[#allocation7 + $0x1c0] sm:$0xff]  ;;  %v1704_v54 = vld [vmem:[#allocation7 + $0x410] sm:$0xff]  ;;  %v5057_v23 = vpack.c.bf16 %v1387_v39, %v1386_v28 }
 0x3ad   :  { %1498 = vmatprep.mubr.f32.mxu0 %v5000_v10  ;;  %v5042_v13 = vpack.c.bf16 %v1701_v6, %v1700_v4  ;;  %v1685_v25 = vld [vmem:[#allocation7 + $0x378] sm:$0xff]  ;;  %v5051_v18 = vpack.c.bf16 %v1403_v7, %v1402_v33  ;;  %v1388_v6 = vld [vmem:[#allocation7 + $0x150] sm:$0xff]  ;;  %v1406_v33 = vld [vmem:[#allocation7 + $0x1e0] sm:$0xff] }
 0x3ae   :  { %1499 = vmatmul.mubr.f32.vlgmr.msra.gmra.mrb[14].mxu0 %v4992_v5  ;;  %v5049_v36 = vpack.c.bf16 %v1685_v25, %v1684_v0  ;;  %v1405_v48 = vld [vmem:[#allocation7 + $0x1d8] sm:$0xff]  ;;  %5520 = vst [vmem:[#allocation16_spill] sm:$0xff] %v5057_v23  ;;  %v1407_v7 = vld [vmem:[#allocation7 + $0x1e8] sm:$0xff]  ;;  %v5069_v28 = vpack.c.bf16 %v1389_v16, %v1388_v6  ;;  %v1708_v6 = vld [vmem:[#allocation7 + $0x430] sm:$0xff] }
 0x3af   :  { %v5010_v49 = vld [vmem:[#allocation3 + $0x10] sm:$0xf]  ;;  %v5012_v52 = vld [vmem:[#allocation3 + $0x8] sm:$0xff]  ;;  %3881 = vmatpush3.bf16.msra.mxu0 %v5002_v24  ;;  %v1705_v17 = vld [vmem:[#allocation7 + $0x418] sm:$0xff]  ;;  %v5063_v4 = vpack.c.bf16 %v1405_v48, %v1404_v30 }
 0x3b0   :  { %3338 = vmatmul.mubr.msk.f32.vlgmr.msra.gmra.mrb[10].mxu1 %vm1431_vm12, %v5010_v49  ;;  %v1428_v41 = vcombine.high %v5012_v52, %v5012_v52  ;;  %3883 = vmatprep.subr.bf16.mxu0 %v5006_v63  ;;  %v5066_v0 = vpack.c.bf16 %v1705_v17, %v1704_v54  ;;  %v1689_v25 = vld [vmem:[#allocation7 + $0x398] sm:$0xff]  ;;  %5524 = vst [vmem:[#allocation17_spill] sm:$0xff] %v5069_v28  ;;  %v1391_v30 = vld [vmem:[#allocation7 + $0x168] sm:$0xff]  ;;  %v1690_v48 = vld [vmem:[#allocation7 + $0x3a0] sm:$0xff] }
 0x3b1   :  { %3957 = vmatpush3.bf16.msra.mxu1 %v5004_v40  ;;  %5522 = vst [vmem:[#allocation14_spill] sm:$0xff] %v5063_v4  ;;  %v5073_v39 = vpack.c.bf16 %v1689_v25, %v1688_v42  ;;  %v5078_v54 = vpack.c.bf16 %v1707_v34, %v1706_v32  ;;  %v1691_v17 = vld [vmem:[#allocation7 + $0x3a8] sm:$0xff]  ;;  %v1709_v16 = vld [vmem:[#allocation7 + $0x438] sm:$0xff]  ;;  %v1692_v32 = vld [vmem:[#allocation7 + $0x3b0] sm:$0xff] }
 0x3b2   :  { %1568 = vmatprep.mubr.f32.mxu0 %v1428_v41  ;;  %1852 = vmatprep.mubr.f32.mxu1 %v1428_v41  ;;  %v1687_v41 = vld [vmem:[#allocation7 + $0x388] sm:$0xff]  ;;  %5523 = vst [vmem:[#allocation15_spill] sm:$0xff] %v5066_v0  ;;  %v5085_v42 = vpack.c.bf16 %v1691_v17, %v1690_v48  ;;  %v5090_v34 = vpack.c.bf16 %v1709_v16, %v1708_v6  ;;  %v1664_v17 = vld [vmem:[#allocation7 + $0x2d0] sm:$0xff]  ;;  %v1665_v6 = vld [vmem:[#allocation7 + $0x2d8] sm:$0xff] }
 0x3b3   :  { %3959 = vmatprep.subr.bf16.mxu1 %v5014_v20  ;;  %3885 = vmatpush3.bf16.msra.mxu0 %v5021_v51  ;;  %v5061_v2 = vpack.c.bf16 %v1687_v41, %v1686_v43  ;;  %v5075_v43 = vpack.c.bf16 %v1407_v7, %v1406_v33  ;;  %v1390_v41 = vld [vmem:[#allocation7 + $0x160] sm:$0xff]  ;;  %v1392_v33 = vld [vmem:[#allocation7 + $0x170] sm:$0xff]  ;;  %v1393_v7 = vld [vmem:[#allocation7 + $0x178] sm:$0xff] }
 0x3b4   :  { %3887 = vmatprep.subr.bf16.mxu0 %v5027_v15  ;;  %v1647_v48 = vld [vmem:[#allocation7 + $0x248] sm:$0xff] }
 0x3b5   :  { %3961 = vmatpush3.bf16.msra.mxu1 %v5025_v59  ;;  %5521 = vst [vmem:[#allocation13_spill] sm:$0xff] %v5061_v2 }
 0x3b6   :  { %3963 = vmatprep.subr.bf16.mxu1 %v5029_v58 }
 0x3b7   :  { %3889 = vmatpush3.bf16.msra.mxu0 %v5033_v21 }
 0x3b8   :  { %3891 = vmatprep.subr.bf16.mxu0 %v5039_v57 }
 0x3b9   :  { %3965 = vmatpush3.bf16.msra.mxu1 %v5037_v53 }
 0x3ba   :  { %3967 = vmatprep.subr.bf16.mxu1 %v5042_v13 }
 0x3bb   :  { %3893 = vmatpush3.bf16.msra.mxu0 %v5045_v1 }
 0x3bc   :  { %3895 = vmatprep.subr.bf16.mxu0 %v5051_v18 }
 0x3bd   :  { %3969 = vmatpush3.bf16.msra.mxu1 %v5049_v36 }
 0x3be   :  { %3971 = vmatprep.subr.bf16.mxu1 %v5054_v26 }
 0x3bf   :  { %3897 = vmatpush3.bf16.msra.mxu0 %v5057_v23  ;;  %v1409_v23 = vld [vmem:[#allocation7 + $0x1f8] sm:$0xff] }
 0x3c0   :  { %3899 = vmatprep.subr.bf16.mxu0 %v5063_v4  ;;  %v5087_v25 = vpack.c.bf16 %v1409_v23, %v1408_v27  ;;  %v1662_v4 = vld [vmem:[#allocation7 + $0x2c0] sm:$0xff] }
 0x3c1   :  { %3973 = vmatpush3.bf16.msra.mxu1 %v5061_v2  ;;  %v5081_v2 = vpack.c.bf16 %v1391_v30, %v1390_v41  ;;  %v5093_v41 = vpack.c.bf16 %v1393_v7, %v1392_v33  ;;  %v1646_v30 = vld [vmem:[#allocation7 + $0x240] sm:$0xff]  ;;  %v5107_v33 = vld [vmem:[#allocation3 + $0x14] sm:$0xff] }
 0x3c2   :  { %3975 = vmatprep.subr.bf16.mxu1 %v5066_v0  ;;  %v1693_v0 = vld [vmem:[#allocation7 + $0x3b8] sm:$0xff]  ;;  %v5103_v16 = vpack.c.bf16 %v1647_v48, %v1646_v30  ;;  %v1666_v7 = vld [vmem:[#allocation7 + $0x2e0] sm:$0xff]  ;;  %v5117_v30 = vcombine.high %v5107_v33, %v5107_v33 }
 0x3c3   :  { %3901 = vmatpush3.bf16.msra.mxu0 %v5069_v28  ;;  %v1663_v28 = vld [vmem:[#allocation7 + $0x2c8] sm:$0xff]  ;;  %v5097_v27 = vpack.c.bf16 %v1693_v0, %v1692_v32  ;;  %v5109_v0 = vpack.c.bf16 %v1665_v6, %v1664_v17 }
 0x3c4   :  { %3903 = vmatprep.subr.bf16.mxu0 %v5075_v43  ;;  %v5099_v23 = vpack.c.bf16 %v1663_v28, %v1662_v4  ;;  %5525 = vst [vmem:[#allocation18_spill] sm:$0xff] %v5103_v16  ;;  %v1648_v4 = vld [vmem:[#allocation7 + $0x250] sm:$0xff]  ;;  %v1649_v28 = vld [vmem:[#allocation7 + $0x258] sm:$0xff]  ;;  %v1667_v32 = vld [vmem:[#allocation7 + $0x2e8] sm:$0xff] }
 0x3c5   :  { %3977 = vmatpush3.bf16.msra.mxu1 %v5073_v39  ;;  %5526 = vst [vmem:[#allocation19_spill] sm:$0xff] %v5109_v0  ;;  %v5119_v48 = vpack.c.bf16 %v1649_v28, %v1648_v4  ;;  %v5123_v17 = vpack.c.bf16 %v1667_v32, %v1666_v7  ;;  %v1651_v6 = vld [vmem:[#allocation7 + $0x268] sm:$0xff]  ;;  %v1652_v28 = vld [vmem:[#allocation7 + $0x270] sm:$0xff]  ;;  %v1653_v7 = vld [vmem:[#allocation7 + $0x278] sm:$0xff] }
 0x3c6   :  { %3979 = vmatprep.subr.bf16.mxu1 %v5078_v54  ;;  %v1670_v32 = vld [vmem:[#allocation7 + $0x300] sm:$0xff] }
 0x3c7   :  { %3905 = vmatpush3.bf16.msra.mxu0 %v5081_v2 }
 0x3c8   :  { %3907 = vmatprep.subr.bf16.mxu0 %v5087_v25 }
 0x3c9   :  { %3981 = vmatpush3.bf16.msra.mxu1 %v5085_v42 }
 0x3ca   :  { %3983 = vmatprep.subr.bf16.mxu1 %v5090_v34 }
 0x3cb   :  { %3909 = vmatpush3.bf16.msra.mxu0 %v5093_v41 }
 0x3cc   :  { %3923 = vmatprep.subr.bf16.mxu0 %v5099_v23 }
 0x3cd   :  { %3985 = vmatpush3.bf16.msra.mxu1 %v5097_v27 }
 0x3ce   :  { %3999 = vmatprep.subr.bf16.mxu1 %v4874_v9  ;;  %1569 = vmatmul.mubr.f32.vlgmr.msra.gmra.mrb[16].mxu0 %v5012_v52  ;;  %v1650_v9 = vld [vmem:[#allocation7 + $0x260] sm:$0xff] }
 0x3cf   :  { %3925 = vmatpush3.bf16.msra.mxu0 %v5103_v16  ;;  %1782 = vmatprep.mubr.f32.mxu0 %v5000_v10  ;;  %v1668_v16 = vld [vmem:[#allocation7 + $0x2f0] sm:$0xff]  ;;  %v1669_v10 = vld [vmem:[#allocation7 + $0x2f8] sm:$0xff]  ;;  %v5129_v4 = vpack.c.bf16 %v1651_v6, %v1650_v9  ;;  %v1654_v9 = vld [vmem:[#allocation7 + $0x280] sm:$0xff] }
 0x3d0   :  { %1853 = vmatmul.mubr.f32.vlgmr.msra.gmra.mrb[12].mxu1 %v5012_v52  ;;  %3927 = vmatprep.subr.bf16.mxu0 %v5109_v0  ;;  %v5132_v52 = vpack.c.bf16 %v1669_v10, %v1668_v16  ;;  %v5137_v0 = vpack.c.bf16 %v1653_v7, %v1652_v28  ;;  %v1655_v6 = vld [vmem:[#allocation7 + $0x288] sm:$0xff]  ;;  %v1672_v16 = vld [vmem:[#allocation7 + $0x310] sm:$0xff]  ;;  %v1673_v10 = vld [vmem:[#allocation7 + $0x318] sm:$0xff] }
 0x3d1   :  { %4001 = vmatpush3.bf16.msra.mxu1 %v4876_v37  ;;  %2003 = vmatprep.mubr.f32.mxu1 %v5117_v30  ;;  %v1671_v37 = vld [vmem:[#allocation7 + $0x308] sm:$0xff]  ;;  %v1656_v28 = vld [vmem:[#allocation7 + $0x290] sm:$0xff]  ;;  %v1657_v7 = vld [vmem:[#allocation7 + $0x298] sm:$0xff] }
 0x3d2   :  { %4003 = vmatprep.subr.bf16.mxu1 %v4878_v44  ;;  %v5140_v44 = vpack.c.bf16 %v1671_v37, %v1670_v32  ;;  %v1674_v32 = vld [vmem:[#allocation7 + $0x320] sm:$0xff]  ;;  %v1675_v37 = vld [vmem:[#allocation7 + $0x328] sm:$0xff] }
 0x3d3   :  { %3929 = vmatpush3.bf16.msra.mxu0 %v5119_v48 }
 0x3d4   :  { %3931 = vmatprep.subr.bf16.mxu0 %v5123_v17 }
 0x3d5   :  { %4005 = vmatpush3.bf16.msra.mxu1 %v4882_v45  ;;  %v5145_v45 = vpack.c.bf16 %v1655_v6, %v1654_v9  ;;  %v1658_v9 = vld [vmem:[#allocation7 + $0x2a0] sm:$0xff]  ;;  %v1659_v6 = vld [vmem:[#allocation7 + $0x2a8] sm:$0xff] }
 0x3d6   :  { %4007 = vmatprep.subr.bf16.mxu1 %v4885_v60  ;;  %v5148_v60 = vpack.c.bf16 %v1673_v10, %v1672_v16  ;;  %v1676_v16 = vld [vmem:[#allocation7 + $0x330] sm:$0xff]  ;;  %v1677_v10 = vld [vmem:[#allocation7 + $0x338] sm:$0xff] }
 0x3d7   :  { %3933 = vmatpush3.bf16.msra.mxu0 %v5129_v4 }
 0x3d8   :  { %3935 = vmatprep.subr.bf16.mxu0 %v5132_v52 }
 0x3d9   :  { %4009 = vmatpush3.bf16.msra.mxu1 %v4888_v29  ;;  %v5153_v29 = vpack.c.bf16 %v1657_v7, %v1656_v28  ;;  %v1660_v28 = vld [vmem:[#allocation7 + $0x2b0] sm:$0xff]  ;;  %v1661_v7 = vld [vmem:[#allocation7 + $0x2b8] sm:$0xff] }
 0x3da   :  { %4011 = vmatprep.subr.bf16.mxu1 %v4891_v50  ;;  %v5156_v50 = vpack.c.bf16 %v1675_v37, %v1674_v32  ;;  %v1711_v32 = vld [vmem:[#allocation7 + $0x448] sm:$0xff] }
 0x3db   :  { %3937 = vmatpush3.bf16.msra.mxu0 %v5137_v0 }
 0x3dc   :  { %3939 = vmatprep.subr.bf16.mxu0 %v5140_v44 }
 0x3dd   :  { %4013 = vmatpush3.bf16.msra.mxu1 %v4894_v8  ;;  %v5161_v8 = vpack.c.bf16 %v1659_v6, %v1658_v9  ;;  %v5527_v9 = vmov 0.0|0.0  }
 0x3de   :  { %4015 = vmatprep.subr.bf16.mxu1 %v4900_v14  ;;  %v5164_v14 = vpack.c.bf16 %v1677_v10, %v1676_v16  ;;  %v1717_v16 = vld [vmem:[#allocation7 + $0x478] sm:$0xff] }
 0x3df   :  { %3941 = vmatpush3.bf16.msra.mxu0 %v5145_v45  ;;  %v1343_v10 = vld [vmem:[#allocation3 + $0x1c] sm:$0xff] }
 0x3e0   :  { %3943 = vmatprep.subr.bf16.mxu0 %v5148_v60 }
 0x3e1   :  { %4017 = vmatpush3.bf16.msra.mxu1 %v4902_v31  ;;  %v5169_v31 = vpack.c.bf16 %v1661_v7, %v1660_v28  ;;  %v5211_v28 = vld [vmem:[#allocation3 + $0x24] sm:$0xf] }
 0x3e2   :  { %4019 = vmatprep.subr.bf16.mxu1 %v4908_v55  ;;  %v1710_v55 = vld [vmem:[#allocation7 + $0x440] sm:$0xff] }
 0x3e3   :  { %3945 = vmatpush3.bf16.msra.mxu0 %v5153_v29  ;;  %v5175_v37 = vpack.c.bf16 %v1711_v32, %v1710_v55 }
 0x3e4   :  { %3947 = vmatprep.subr.bf16.mxu0 %v5156_v50 }
 0x3e5   :  { %4021 = vmatpush3.bf16.msra.mxu1 %v4911_v35  ;;  %v1712_v35 = vld [vmem:[#allocation7 + $0x450] sm:$0xff] }
 0x3e6   :  { %4023 = vmatprep.subr.bf16.mxu1 %v4923_v11  ;;  %v1713_v11 = vld [vmem:[#allocation7 + $0x458] sm:$0xff] }
 0x3e7   :  { %3949 = vmatpush3.bf16.msra.mxu0 %v5161_v8  ;;  %v5182_v6 = vpack.c.bf16 %v1713_v11, %v1712_v35 }
 0x3e8   :  { %3951 = vmatprep.subr.bf16.mxu0 %v5164_v14 }
 0x3e9   :  { %4025 = vmatpush3.bf16.msra.mxu1 %v4926_v47  ;;  %v1714_v47 = vld [vmem:[#allocation7 + $0x460] sm:$0xff] }
 0x3ea   :  { %4027 = vmatprep.subr.bf16.mxu1 %v4933_v12  ;;  %v1715_v12 = vld [vmem:[#allocation7 + $0x468] sm:$0xff] }
 0x3eb   :  { %3953 = vmatpush3.bf16.msra.mxu0 %v5169_v31 }
 0x3ec   :  { %3986 = vmatprep.subr.bf16.mxu0 %v5527_v9 }
 0x3ed   :  { %4029 = vmatpush3.bf16.msra.mxu1 %v4936_v56  ;;  %v5193_v56 = vpack.c.bf16 %v1715_v12, %v1714_v47  ;;  %v2549_v12 = vld [vmem:[%s5484_s9] sm:$0xff] }
 0x3ee   :  { %1783 = vmatmul.mubr.f32.vlgmr.msra.gmra.mrb[18].mxu0 %v4992_v5  ;;  %4062 = vmatprep.subr.bf16.mxu1 %v5527_v9  ;;  %v1716_v5 = vld [vmem:[#allocation7 + $0x470] sm:$0xff] }
 0x3ef   :  { %3988 = vmatpush3.bf16.msra.mxu0 %v5175_v37  ;;  %3356 = vmatprep.mubr.msk.f32.mxu0 %vm4326_vm13, %v4918_v22 }
 0x3f0   :  { %2004 = vmatmul.mubr.f32.vlgmr.msra.gmra.mrb[14].mxu1 %v5107_v33  ;;  %3989 = vmatprep.subr.bf16.mxu0 %v5527_v9 }
 0x3f1   :  { %4064 = vmatpush3.bf16.msra.mxu1 %v4906_v46  ;;  %3375 = vmatprep.mubr.msk.f32.mxu1 %vm4326_vm13, %v4918_v22  ;;  %v5199_v46 = vpack.c.bf16 %v1717_v16, %v1716_v5  ;;  %v2551_v5 = vld [vmem:[%s5484_s9 + $0x10] sm:$0xff] }
 0x3f2   :  { %4065 = vmatprep.subr.bf16.mxu1 %v5527_v9 }
 0x3f3   :  { %3991 = vmatpush3.bf16.msra.mxu0 %v5182_v6 }
 0x3f4   :  { %3992 = vmatprep.subr.bf16.mxu0 %v5527_v9 }
 0x3f5   :  { %4067 = vmatpush3.bf16.msra.mxu1 %v4916_v3  ;;  %v1934_v3 = vcombine.high %v1343_v10, %v1343_v10 }
 0x3f6   :  { %4068 = vmatprep.subr.bf16.mxu1 %v5527_v9 }
 0x3f7   :  { %3994 = vmatpush3.bf16.msra.mxu0 %v5193_v56 }
 0x3f8   :  { %3995 = vmatprep.subr.bf16.mxu0 %v5527_v9 }
 0x3f9   :  { %4070 = vmatpush3.bf16.msra.mxu1 %v4930_v19  ;;  %v5528_v19 = vld [vmem:[#allocation16_spill] sm:$0xff] }
 0x3fa   :  { %4071 = vmatprep.subr.bf16.mxu1 %v5527_v9 }
 0x3fb   :  { %3997 = vmatpush3.bf16.msra.mxu0 %v5199_v46 }
 0x3fc   :  { %4031 = vmatprep.subr.bf16.mxu0 %v4943_v62  ;;  %v5530_v62 = vld [vmem:[#allocation13_spill] sm:$0xff] }
 0x3fd   :  { %4073 = vmatpush3.bf16.msra.mxu1 %v4938_v61  ;;  %v5529_v61 = vld [vmem:[#allocation14_spill] sm:$0xff] }
 0x3fe   :  { %3357 = vmatmul.mubr.msk.f32.vlgmr.msra.gmra.mrb[20].mxu0 %vm1431_vm12, %v5010_v49  ;;  %4107 = vmatprep.subr.bf16.mxu1 %v4946_v38  ;;  %v5531_v38 = vld [vmem:[#allocation15_spill] sm:$0xff] }
 0x3ff   :  { %4033 = vmatpush3.bf16.msra.mxu0 %v5002_v24  ;;  %2073 = vmatprep.mubr.f32.mxu0 %v1934_v3  ;;  %v5532_v24 = vld [vmem:[#allocation17_spill] sm:$0xff]  ;;  %v2364_v49 = vld [vmem:[%s5482_s7] sm:$0xff] }
 0x400   :  { %3376 = vmatmul.mubr.msk.f32.vlgmr.msra.gmra.mrb[16].mxu1 %vm1431_vm12, %v5211_v28  ;;  %4035 = vmatprep.subr.bf16.mxu0 %v5006_v63  ;;  %v5534_v63 = vld [vmem:[#allocation19_spill] sm:$0xff] }
 0x401   :  { %4109 = vmatpush3.bf16.msra.mxu1 %v5004_v40  ;;  %2285 = vmatprep.mubr.f32.mxu1 %v1934_v3  ;;  %v5533_v40 = vld [vmem:[#allocation18_spill] sm:$0xff]  ;;  %v2553_v3 = vld [vmem:[%s5484_s9 + $0x20] sm:$0xff] }
 0x402   :  { %4111 = vmatprep.subr.bf16.mxu1 %v5014_v20  ;;  %v2365_v20 = vld [vmem:[%s5482_s7 + $0x8] sm:$0xff] }
 0x403   :  { %4037 = vmatpush3.bf16.msra.mxu0 %v5021_v51  ;;  %v2366_v51 = vld [vmem:[%s5482_s7 + $0x10] sm:$0xff] }
 0x404   :  { %4039 = vmatprep.subr.bf16.mxu0 %v5027_v15  ;;  %v2367_v15 = vld [vmem:[%s5482_s7 + $0x18] sm:$0xff] }
 0x405   :  { %4113 = vmatpush3.bf16.msra.mxu1 %v5025_v59  ;;  %v4151_v59 = vpack.c.bf16 %v2365_v20, %v2364_v49 }
 0x406   :  { %4115 = vmatprep.subr.bf16.mxu1 %v5029_v58  ;;  %v4154_v58 = vpack.c.bf16 %v2367_v15, %v2366_v51  ;;  %v2557_v15 = vld [vmem:[%s5484_s9 + $0x40] sm:$0xff] }
 0x407   :  { %4041 = vmatpush3.bf16.msra.mxu0 %v5033_v21  ;;  %v2368_v21 = vld [vmem:[%s5482_s7 + $0x20] sm:$0xff] }
 0x408   :  { %4043 = vmatprep.subr.bf16.mxu0 %v5039_v57 }
 0x409   :  { %4117 = vmatpush3.bf16.msra.mxu1 %v5037_v53  ;;  %v2369_v53 = vld [vmem:[%s5482_s7 + $0x28] sm:$0xff] }
 0x40a   :  { %4119 = vmatprep.subr.bf16.mxu1 %v5042_v13  ;;  %v4157_v57 = vpack.c.bf16 %v2369_v53, %v2368_v21 }
 0x40b   :  { %4045 = vmatpush3.bf16.msra.mxu0 %v5045_v1 }
 0x40c   :  { %4047 = vmatprep.subr.bf16.mxu0 %v5051_v18 }
 0x40d   :  { %4121 = vmatpush3.bf16.msra.mxu1 %v5049_v36 }
 0x40e   :  { %4123 = vmatprep.subr.bf16.mxu1 %v5054_v26 }
 0x40f   :  { %4049 = vmatpush3.bf16.msra.mxu0 %v5528_v19 }
 0x410   :  { %4051 = vmatprep.subr.bf16.mxu0 %v5529_v61  ;;  %v2555_v61 = vld [vmem:[%s5484_s9 + $0x30] sm:$0xff] }
 0x411   :  { %4125 = vmatpush3.bf16.msra.mxu1 %v5530_v62  ;;  %v2556_v62 = vld [vmem:[%s5484_s9 + $0x38] sm:$0xff] }
 0x412   :  { %4127 = vmatprep.subr.bf16.mxu1 %v5531_v38  ;;  %v4208_v49 = vpack.c.bf16 %v2556_v62, %v2555_v61  ;;  %v2708_v61 = vld [vmem:[%s5482_s7 + $0xf8] sm:$0xff] }
 0x413   :  { %4053 = vmatpush3.bf16.msra.mxu0 %v5532_v24 }
 0x414   :  { %4055 = vmatprep.subr.bf16.mxu0 %v5075_v43 }
 0x415   :  { %4129 = vmatpush3.bf16.msra.mxu1 %v5073_v39  ;;  %v2371_v39 = vld [vmem:[%s5482_s7 + $0x38] sm:$0xff] }
 0x416   :  { %4131 = vmatprep.subr.bf16.mxu1 %v5078_v54  ;;  %v2372_v54 = vld [vmem:[%s5482_s7 + $0x40] sm:$0xff] }
 0x417   :  { %4057 = vmatpush3.bf16.msra.mxu0 %v5081_v2  ;;  %v2370_v2 = vld [vmem:[%s5482_s7 + $0x30] sm:$0xff] }
 0x418   :  { %4059 = vmatprep.subr.bf16.mxu0 %v5087_v25  ;;  %v4160_v43 = vpack.c.bf16 %v2371_v39, %v2370_v2 }
 0x419   :  { %4133 = vmatpush3.bf16.msra.mxu1 %v5085_v42  ;;  %v2373_v42 = vld [vmem:[%s5482_s7 + $0x48] sm:$0xff] }
 0x41a   :  { %4135 = vmatprep.subr.bf16.mxu1 %v5090_v34  ;;  %v4163_v25 = vpack.c.bf16 %v2373_v42, %v2372_v54  ;;  %v2374_v34 = vld [vmem:[%s5482_s7 + $0x50] sm:$0xff] }
 0x41b   :  { %4061 = vmatpush3.bf16.msra.mxu0 %v5093_v41  ;;  %v2375_v41 = vld [vmem:[%s5482_s7 + $0x58] sm:$0xff] }
 0x41c   :  { %4075 = vmatprep.subr.bf16.mxu0 %v5099_v23  ;;  %v2376_v23 = vld [vmem:[%s5482_s7 + $0x60] sm:$0xff] }
 0x41d   :  { %4137 = vmatpush3.bf16.msra.mxu1 %v5097_v27  ;;  %v4166_v27 = vpack.c.bf16 %v2375_v41, %v2374_v34 }
 0x41e   :  { %2074 = vmatmul.mubr.f32.vlgmr.msra.gmra.mrb[22].mxu0 %v1343_v10  ;;  %4150 = vmatprep.subr.bf16.mxu1 %v5527_v9 }
 0x41f   :  { %4077 = vmatpush3.bf16.msra.mxu0 %v5533_v40  ;;  %2215 = vmatprep.mubr.f32.mxu0 %v5117_v30  ;;  %v5331_v30 = vld [vmem:[%s5481_s6] ss:$0 sm:$0xff] }
 0x420   :  { %2286 = vmatmul.mubr.f32.vlgmr.msra.gmra.mrb[18].mxu1 %v1343_v10  ;;  %4079 = vmatprep.subr.bf16.mxu0 %v5534_v63 }
 0x421   :  { %3429 = vmatprep.mubr.msk.f32.mxu1 %vm4326_vm13, %v4918_v22  ;;  %4152 = vmatpush3.bf16.msra.mxu1 %v4151_v59 }
 0x422   :  { %4153 = vmatprep.subr.bf16.mxu1 %v5527_v9 }
 0x423   :  { %4081 = vmatpush3.bf16.msra.mxu0 %v5119_v48 }
 0x424   :  { %4083 = vmatprep.subr.bf16.mxu0 %v5123_v17 }
 0x425   :  { %4155 = vmatpush3.bf16.msra.mxu1 %v4154_v58  ;;  %v2558_v58 = vld [vmem:[%s5484_s9 + $0x48] sm:$0xff] }
 0x426   :  { %4156 = vmatprep.subr.bf16.mxu1 %v5527_v9  ;;  %v4211_v53 = vpack.c.bf16 %v2558_v58, %v2557_v15  ;;  %v2709_v15 = vld [vmem:[%s5485_s10] ss:$0 sm:$0xff] }
 0x427   :  { %4085 = vmatpush3.bf16.msra.mxu0 %v5129_v4  ;;  %v2378_v4 = vld [vmem:[%s5482_s7 + $0x70] sm:$0xff] }
 0x428   :  { %4087 = vmatprep.subr.bf16.mxu0 %v5132_v52  ;;  %v2379_v52 = vld [vmem:[%s5482_s7 + $0x78] sm:$0xff] }
 0x429   :  { %4158 = vmatpush3.bf16.msra.mxu1 %v4157_v57  ;;  %v2559_v57 = vld [vmem:[%s5484_s9 + $0x50] sm:$0xff] }
 0x42a   :  { %4159 = vmatprep.subr.bf16.mxu1 %v5527_v9 }
 0x42b   :  { %4089 = vmatpush3.bf16.msra.mxu0 %v5137_v0 }
 0x42c   :  { %4091 = vmatprep.subr.bf16.mxu0 %v5140_v44 }
 0x42d   :  { %4161 = vmatpush3.bf16.msra.mxu1 %v4160_v43 }
 0x42e   :  { %4162 = vmatprep.subr.bf16.mxu1 %v5527_v9 }
 0x42f   :  { %4093 = vmatpush3.bf16.msra.mxu0 %v5145_v45 }
 0x430   :  { %4095 = vmatprep.subr.bf16.mxu0 %v5148_v60 }
 0x431   :  { %4164 = vmatpush3.bf16.msra.mxu1 %v4163_v25 }
 0x432   :  { %4165 = vmatprep.subr.bf16.mxu1 %v5527_v9 }
 0x433   :  { %4097 = vmatpush3.bf16.msra.mxu0 %v5153_v29  ;;  %v4172_v29 = vpack.c.bf16 %v2379_v52, %v2378_v4 }
 0x434   :  { %4099 = vmatprep.subr.bf16.mxu0 %v5156_v50 }
 0x435   :  { %4167 = vmatpush3.bf16.msra.mxu1 %v4166_v27 }
 0x436   :  { %4168 = vmatprep.subr.bf16.mxu1 %v5527_v9 }
 0x437   :  { %4101 = vmatpush3.bf16.msra.mxu0 %v5161_v8 }
 0x438   :  { %4103 = vmatprep.subr.bf16.mxu0 %v5164_v14 }
 0x43b   :  { %4105 = vmatpush3.bf16.msra.mxu0 %v5169_v31 }
 0x43c   :  { %4138 = vmatprep.subr.bf16.mxu0 %v5527_v9 }
 0x43e   :  { %2216 = vmatmul.mubr.f32.vlgmr.msra.gmra.mrb[24].mxu0 %v5107_v33  ;;  %v2377_v33 = vld [vmem:[%s5482_s7 + $0x68] sm:$0xff] }
 0x43f   :  { %4140 = vmatpush3.bf16.msra.mxu0 %v5175_v37  ;;  %3394 = vmatprep.mubr.msk.f32.mxu0 %vm4326_vm13, %v4918_v22  ;;  %v4169_v0 = vpack.c.bf16 %v2377_v33, %v2376_v23 }
 0x440   :  { %4141 = vmatprep.subr.bf16.mxu0 %v5527_v9 }
 0x441   :  { %4170 = vmatpush3.bf16.msra.mxu1 %v4169_v0 }
 0x442   :  { %4171 = vmatprep.subr.bf16.mxu1 %v5527_v9 }
 0x443   :  { %4143 = vmatpush3.bf16.msra.mxu0 %v5182_v6 }
 0x444   :  { %4144 = vmatprep.subr.bf16.mxu0 %v5527_v9 }
 0x445   :  { %4173 = vmatpush3.bf16.msra.mxu1 %v4172_v29  ;;  %v2693_v29 = vld [vmem:[%s5482_s7 + $0x80] sm:$0xff] }
 0x446   :  { %4174 = vmatprep.subr.bf16.mxu1 %v5527_v9 }
 0x447   :  { %4146 = vmatpush3.bf16.msra.mxu0 %v5193_v56  ;;  %v2550_v56 = vld [vmem:[%s5484_s9 + $0x8] sm:$0xff] }
 0x448   :  { %4147 = vmatprep.subr.bf16.mxu0 %v5527_v9  ;;  %v4199_v16 = vpack.c.bf16 %v2550_v56, %v2549_v12  ;;  %v2702_v12 = vld [vmem:[%s5482_s7 + $0xc8] sm:$0xff] }
 0x44b   :  { %4149 = vmatpush3.bf16.msra.mxu0 %v5199_v46  ;;  %v2552_v46 = vld [vmem:[%s5484_s9 + $0x18] sm:$0xff] }
 0x44c   :  { %4198 = vmatprep.subr.bf16.mxu0 %v5527_v9  ;;  %v4202_v10 = vpack.c.bf16 %v2552_v46, %v2551_v5  ;;  %v2703_v5 = vld [vmem:[%s5482_s7 + $0xd0] sm:$0xff] }
 0x44e   :  { %3395 = vmatmul.mubr.msk.f32.vlgmr.msra.gmra.mrb[26].mxu0 %vm1431_vm12, %v5211_v28  ;;  %v2554_v28 = vld [vmem:[%s5484_s9 + $0x28] sm:$0xff] }
 0x44f   :  { %3499 = vmatprep.mubr.msk.f32.mxu0 %vm4326_vm13, %v4918_v22  ;;  %4200 = vmatpush3.bf16.msra.mxu0 %v4199_v16  ;;  %v4205_v19 = vpack.c.bf16 %v2554_v28, %v2553_v3  ;;  %v2704_v16 = vld [vmem:[%s5482_s7 + $0xd8] sm:$0xff]  ;;  %v2706_v3 = vld [vmem:[%s5482_s7 + $0xe8] sm:$0xff] }
 0x450   :  { %4201 = vmatprep.subr.bf16.mxu0 %v5527_v9  ;;  %v4190_v46 = vpack.c.bf16 %v2704_v16, %v2703_v5 }
 0x453   :  { %4203 = vmatpush3.bf16.msra.mxu0 %v4202_v10  ;;  %v2705_v10 = vld [vmem:[%s5482_s7 + $0xe0] sm:$0xff] }
 0x454   :  { %4204 = vmatprep.subr.bf16.mxu0 %v5527_v9  ;;  %v4193_v28 = vpack.c.bf16 %v2706_v3, %v2705_v10 }
 0x457   :  { %4206 = vmatpush3.bf16.msra.mxu0 %v4205_v19  ;;  %v2707_v19 = vld [vmem:[%s5482_s7 + $0xf0] sm:$0xff] }
 0x458   :  { %4207 = vmatprep.subr.bf16.mxu0 %v5527_v9  ;;  %v4196_v62 = vpack.c.bf16 %v2708_v61, %v2707_v19 }
 0x45b   :  { %4209 = vmatpush3.bf16.msra.mxu0 %v4208_v49  ;;  %v2692_v49 = vld [vmem:[%s5483_s8] ss:$0 sm:$0xff] }
 0x45c   :  { %4210 = vmatprep.subr.bf16.mxu0 %v5527_v9 }
 0x45f   :  { %4212 = vmatpush3.bf16.msra.mxu0 %v4211_v53 }
 0x460   :  { %4213 = vmatprep.subr.bf16.mxu0 %v5527_v9 }
 0x481   :  { %v2918_v13 = vpop.f32.mrb[14].mxu0 }
 0x482   :  { %v2919_v1 = vpop.f32.mrb[15].mxu0 }
 0x483   :  { %v1640_v36 = vpop.f32.mrb[10].mxu1  ;;  %v2920_v18 = vadd.f32 %v2919_v1, %v2918_v13  ;;  %v2560_v13 = vld [vmem:[%s5484_s9 + $0x58] sm:$0xff] }
 0x484   :  { %v3339_v26 = vpop.f32.mrb[11].mxu1  ;;  %v4214_v1 = vpack.c.bf16 %v2560_v13, %v2559_v57 }
 0x485   :  { %v1501_v44 = vadd.f32 %v2920_v18, %v5331_v30  ;;  %v2562_v18 = vld [vmem:[%s5484_s9 + $0x68] sm:$0xff] }
 0x486   :  { %4215 = vmatpush3.bf16.msra.mxu0 %v4214_v1 }
 0x487   :  { %4216 = vmatprep.subr.bf16.mxu0 %v5527_v9 }
 0x4a1   :  { %v2953_v48 = vpop.f32.mrb[16].mxu0 }
 0x4a2   :  { %v2954_v17 = vpop.f32.mrb[17].mxu0 }
 0x4a3   :  { %v2955_v45 = vadd.f32 %v2954_v17, %v2953_v48  ;;  %v3032_v60 = vpop.f32.mrb[12].mxu1 }
 0x4a4   :  { %v3033_v50 = vpop.f32.mrb[13].mxu1 }
 0x4a5   :  { %v1571_v8 = vadd.f32 %v2955_v45, %v1501_v44  ;;  %v3034_v14 = vadd.f32 %v3033_v50, %v3032_v60  ;;  %v2694_v50 = vld [vmem:[%s5482_s7 + $0x88] sm:$0xff] }
 0x4a7   :  { %v1641_v7 = vadd.f32 %v1640_v36, %v1571_v8  ;;  %v2561_v36 = vld [vmem:[%s5484_s9 + $0x60] sm:$0xff] }
 0x4a8   :  { %v4217_v26 = vpack.c.bf16 %v2562_v18, %v2561_v36 }
 0x4a9   :  { %v1644_v20 = vmax.f32 %v1641_v7, 0.0 }
 0x4aa   :  { %4218 = vmatpush3.bf16.msra.mxu0 %v4217_v26 }
 0x4ab   :  { %4219 = vmatprep.subr.bf16.mxu0 %v5527_v9 }
 0x4c1   :  { %v2997_v31 = vpop.f32.mrb[18].mxu0 }
 0x4c2   :  { %v2998_v55 = vpop.f32.mrb[19].mxu0 }
 0x4c3   :  { %v2999_v32 = vadd.f32 %v2998_v55, %v2997_v31  ;;  %v3076_v37 = vpop.f32.mrb[14].mxu1  ;;  %v2695_v31 = vld [vmem:[%s5482_s7 + $0x90] sm:$0xff] }
 0x4c4   :  { %v3077_v35 = vpop.f32.mrb[15].mxu1 }
 0x4c5   :  { %v1785_v11 = vadd.f32 %v2999_v32, %v5331_v30  ;;  %v3078_v6 = vadd.f32 %v3077_v35, %v3076_v37  ;;  %v2697_v32 = vld [vmem:[%s5482_s7 + $0xa0] sm:$0xff]  ;;  %v2698_v37 = vld [vmem:[%s5482_s7 + $0xa8] sm:$0xff] }
 0x4c6   :  { %v4181_v35 = vpack.c.bf16 %v2698_v37, %v2697_v32 }
 0x4c7   :  { %v1855_v47 = vadd.f32 %v3034_v14, %v1785_v11  ;;  %v2006_v43 = vadd.f32 %v3078_v6, %v5331_v30  ;;  %v4175_v14 = vpack.c.bf16 %v2694_v50, %v2693_v29  ;;  %v2699_v11 = vld [vmem:[%s5482_s7 + $0xb0] sm:$0xff] }
 0x4d1   :  { %v1924_v38 = vpop.f32.mrb[20].mxu0 }
 0x4d2   :  { %v1925_v24 = vadd.f32 %v1924_v38, %v1855_v47  ;;  %v3358_v40 = vpop.f32.mrb[21].mxu0  ;;  %v2701_v47 = vld [vmem:[%s5482_s7 + $0xc0] sm:$0xff] }
 0x4d3   :  { %v2145_v63 = vpop.f32.mrb[16].mxu1  ;;  %v4187_v56 = vpack.c.bf16 %v2702_v12, %v2701_v47  ;;  %v2564_v40 = vld [vmem:[%s5484_s9 + $0x78] sm:$0xff] }
 0x4d4   :  { %v1928_v51 = vmax.f32 %v1925_v24, 0.0  ;;  %v3377_v59 = vpop.f32.mrb[17].mxu1  ;;  %v2563_v24 = vld [vmem:[%s5484_s9 + $0x70] sm:$0xff]  ;;  %s4287_s9 = scalar_lea.vmem %s2651_s3, 32 }
 0x4d5   :  { %p4288_p2 = scmp.ne.s32.totalorder %s2651_s3, %s4287_s9  ;;  %p4293_p4 = scmp.lt.s32.totalorder %s4287_s9, %s4287_s9 }
 0x4d6   :  { %v1929_v21 = vmax.f32 %v1644_v20, %v1928_v51 }
 0x4d7   :  { %p4294_p5 = por %p4293_p4, %p4292_p3 }
 0x4d9   :  { %p4295_p6 = pnand %p4294_p5, %p4288_p2 }
 0x4f1   :  { %v3111_v2 = vpop.f32.mrb[22].mxu0 }
 0x4f2   :  { %v3112_v39 = vpop.f32.mrb[23].mxu0 }
 0x4f3   :  { %v3113_v54 = vadd.f32 %v3112_v39, %v3111_v2  ;;  %v3190_v42 = vpop.f32.mrb[18].mxu1 }
 0x4f4   :  { %v3191_v25 = vpop.f32.mrb[19].mxu1 }
 0x4f5   :  { %v2076_v34 = vadd.f32 %v3113_v54, %v2006_v43  ;;  %v3192_v41 = vadd.f32 %v3191_v25, %v3190_v42 }
 0x4f7   :  { %v2146_v27 = vadd.f32 %v2145_v63, %v2076_v34  ;;  %v4220_v63 = vpack.c.bf16 %v2564_v40, %v2563_v24 }
 0x4f9   :  { %v2149_v23 = vmax.f32 %v2146_v27, 0.0  ;;  %4221 = vmatpush3.bf16.msra.mxu0 %v4220_v63 }
 0x4fb   :  { %v2150_v33 = vmax.f32 %v1929_v21, %v2149_v23 }
 0x511   :  { %v3155_v0 = vpop.f32.mrb[24].mxu0 }
 0x512   :  { %v3156_v48 = vpop.f32.mrb[25].mxu0 }
 0x513   :  { %v3157_v17 = vadd.f32 %v3156_v48, %v3155_v0 }
 0x515   :  { %v2218_v4 = vadd.f32 %v3157_v17, %v5331_v30  ;;  %v2696_v30 = vld [vmem:[%s5482_s7 + $0x98] sm:$0xff] }
 0x516   :  { %v4178_v55 = vpack.c.bf16 %v2696_v30, %v2695_v31 }
 0x517   :  { %v2288_v52 = vadd.f32 %v3192_v41, %v2218_v4 }
 0x521   :  { %v2357_v44 = vpop.f32.mrb[26].mxu0 }
 0x522   :  { %v2358_v45 = vadd.f32 %v2357_v44, %v2288_v52  ;;  %v3396_v60 = vpop.f32.mrb[27].mxu0 }
 0x524   :  { %v2361_v8 = vmax.f32 %v2358_v45, 0.0 }
 0x526   :  { %v2362_v7 = vmax.f32 %v2150_v33, %v2361_v8 }
 0x528   :  { %3430 = vmatmul.mubr.f32.vlgmr.msra.gmra.mrb[20].mxu1 %v2362_v7  ;;  %v2475_v38 = vrot.slane %v2362_v7, 2 }
 0x529   :  { %4176 = vmatpush3.bf16.msra.mxu1 %v4175_v14  ;;  %3464 = vmatprep.mubr.msk.f32.mxu1 %vm4326_vm13, %v4918_v22  ;;  %v2700_v22 = vld [vmem:[%s5482_s7 + $0xb8] sm:$0xff] }
 0x52a   :  { %4177 = vmatprep.subr.bf16.mxu1 %v5527_v9  ;;  %v4184_v6 = vpack.c.bf16 %v2700_v22, %v2699_v11 }
 0x52d   :  { %4179 = vmatpush3.bf16.msra.mxu1 %v4178_v55 }
 0x52e   :  { %4180 = vmatprep.subr.bf16.mxu1 %v5527_v9 }
 0x531   :  { %4182 = vmatpush3.bf16.msra.mxu1 %v4181_v35 }
 0x532   :  { %4183 = vmatprep.subr.bf16.mxu1 %v5527_v9 }
 0x535   :  { %4185 = vmatpush3.bf16.msra.mxu1 %v4184_v6 }
 0x536   :  { %4186 = vmatprep.subr.bf16.mxu1 %v5527_v9 }
 0x539   :  { %4188 = vmatpush3.bf16.msra.mxu1 %v4187_v56 }
 0x53a   :  { %4189 = vmatprep.subr.bf16.mxu1 %v5527_v9 }
 0x53d   :  { %4191 = vmatpush3.bf16.msra.mxu1 %v4190_v46 }
 0x53e   :  { %4192 = vmatprep.subr.bf16.mxu1 %v5527_v9 }
 0x541   :  { %4194 = vmatpush3.bf16.msra.mxu1 %v4193_v28 }
 0x542   :  { %4195 = vmatprep.subr.bf16.mxu1 %v5527_v9 }
 0x545   :  { %4197 = vmatpush3.bf16.msra.mxu1 %v4196_v62 }
 0x548   :  { %3465 = vmatmul.mubr.f32.vlgmr.msra.gmra.mrb[20].mxu1 %v2475_v38 }
 0x61b   :  { %v2543_v20 = vpop.f32.mrb[20].mxu1 }
 0x61c   :  { %v4222_v51 = vadd.f32 %v2692_v49, %v2543_v20  ;;  %v3466_v9 = vpop.f32.mrb[21].mxu1 }
 0x61e   :  { %v2548_v59 = vmax.f32 %v4222_v51, 0.0 }
 0x620   :  { %3500 = vmatmul.mubr.f32.vlgmr.msra.gmra.mrb[28].mxu0 %v2548_v59 }
 0x6f3   :  { %v2638_v58 = vpop.f32.mrb[28].mxu0 }
 0x6f4   :  { %v2639_v21 = vadd.f32 %v2709_v15, %v2638_v58  ;;  %v3501_v53 = vpop.f32.mrb[29].mxu0 }
 0x6f6   :  { %2643 = vst.msk [vmem:[#allocation9] sm:$0x3] %vm2642_vm2, %v2639_v21 }
 0x6f7   :  { %4298 = shalt.err (!%p4295_p6)
}
 0x6f8   :  { %s4299_s23 = scalar_lea.hbm %s5486_s11, 32 }
 0x6f9   :  { %p4300_p7 = scmp.ne.s32.totalorder %s5486_s11, %s4299_s23  ;;  %p4303_p8 = scmp.lt.u32.totalorder %s4299_s23, %s5486_s11 }
 0x6fb   :  { %p4305_p9 = pnand %p4303_p8, %p4300_p7 }
 0x6fd   :  { %4308 = shalt.err (!%p4305_p9)
}
 0x6fe   :  { %2653 = dma.vmem_to_hbm [thread:$0]  %s2651_s3, 32, %s5486_s11, [#allocation6]  }
 0x6ff   :  { %4313 = dma.done.wait [#allocation6], 32  }
 0x700   :  { %4314 = vsyncadd [#allocation6], 4294967264 }
 0x701   :  { %2657 = vsyncpa [#allocation5], 1 }
 0x702   :  { %2658 = vsyncpa [#allocation8], 1 }
 0x703   :  { %2659 = vsyncpa [#allocation6], 1 }

</bundles_post_ra>
